<compile_context>
chip_gen: v7x
topology: tpu7x:2x2x1
jax: 0.10.0
libtpu: 0.0.40
codegen_flags: <defaults>
</compile_context>

<pallas_src>
import functools

import jax
import jax.numpy as jnp
from jax.experimental import pallas as pl
from jax.experimental.pallas import tpu as pltpu

TEMPORAL_FEAT = 512   # r3d_18 fc.in_features
SPATIAL_FEAT = 512    # resnet18 fc.in_features
TRAJ_IN = 12
NUM_CLASSES = 8

F = 512        # stem feature width (both backbones)
P = 256        # temporal / spatial projection width
RJ = 128       # lane-padded width for all trajectory-branch intermediates
NC_PAD = 128   # lane-dense classifier output width


def _round_up(x, m):
    return (x + m - 1) // m * m


def late_fusion_kernel(x_ref, wstem_ref, w512_ref, w256_ref, bias_ref, out_ref, *, K):
    f32, bf16 = jnp.float32, jnp.bfloat16
    relu = lambda v: jnp.maximum(v, 0.0)
    S1 = F + K * F + RJ            # block-diagonal stem output width

    def mm(a, w):
        # bf16 MXU operands, f32 accumulation; elementwise math stays f32.
        return jnp.dot(a.astype(bf16), w, preferred_element_type=f32)

    # ---- all three branch stems in ONE block-diagonal MXU pass ---------------
    #   cols [0, F)                 : temporal stem          Linear(3 -> 512)
    #   cols [F + k*F, F + (k+1)*F) : spatial stem, frame k  (shared Linear(3 -> 512))
    #   cols [F + K*F, S1)          : trajectory layer 1     Linear(12 -> 64), lane-padded
    stem = relu(mm(x_ref[...], wstem_ref[...]) + bias_ref[:, 0:S1])     # [TB, S1]

    t_feat = stem[:, 0:F]                                               # [TB, 512]
    s_pool = stem[:, F:2 * F]
    for k in range(1, K):                                               # static K-way mean
        s_pool = s_pool + stem[:, F + k * F:F + (k + 1) * F]
    s_pool = s_pool * (1.0 / K)                                         # AdaptiveAvgPool1d(1)
    r1 = stem[:, F + K * F:S1]                                          # [TB, 128] (lanes 64: zero)

    # ---- trajectory layer 2 + trajectory_proj (tiny dots, lane-padded) -------
    r2 = relu(mm(r1, w256_ref[0:RJ, 1024:1152]) + bias_ref[:, S1:S1 + RJ])
    r_proj = relu(mm(r2, w256_ref[0:RJ, 1152:1280]) + bias_ref[:, S1 + 640:S1 + 768])

    # ---- temporal / spatial projections ---------------------------------------
    t_proj = relu(mm(t_feat, w512_ref[:, 0:P]) + bias_ref[:, S1 + 128:S1 + 384])
    s_proj = relu(mm(s_pool, w512_ref[:, P:2 * P]) + bias_ref[:, S1 + 384:S1 + 640])

    # ---- fusion MLP (branch-weight softmax folded into the Wf1 row-blocks) ---
    h = relu(mm(t_proj, w256_ref[:, 0:256])
             + mm(s_proj, w256_ref[:, 256:512])
             + mm(r_proj, w256_ref[0:RJ, 512:768])
             + bias_ref[:, S1 + 768:S1 + 1024])                         # [TB, 256]
    h = relu(mm(h, w256_ref[:, 768:896]) + bias_ref[:, S1 + 1024:S1 + 1152])  # [TB, 128]
    out_ref[...] = (mm(h, w256_ref[0:RJ, 896:1024])
                    + bias_ref[:, S1 + 1152:S1 + 1280]).astype(out_ref.dtype)


def init_params(key, num_classes):
    def lin(k, fan_in, fan_out):
        kw, kb = jax.random.split(k)
        return (0.02 * jax.random.normal(kw, (fan_in, fan_out), jnp.float32),
                0.02 * jax.random.normal(kb, (1, fan_out), jnp.float32))

    keys = jax.random.split(key, 10)
    p = {}
    p["w_tstem"], p["b_tstem"] = lin(keys[0], 3, TEMPORAL_FEAT)
    p["w_sstem"], p["b_sstem"] = lin(keys[1], 3, SPATIAL_FEAT)
    p["w_tproj"], p["b_tproj"] = lin(keys[2], TEMPORAL_FEAT, 256)
    p["w_sproj"], p["b_sproj"] = lin(keys[3], SPATIAL_FEAT, 256)
    p["w_tr1"], p["b_tr1"] = lin(keys[4], TRAJ_IN, 64)
    p["w_tr2"], p["b_tr2"] = lin(keys[5], 64, 32)
    p["w_trproj"], p["b_trproj"] = lin(keys[6], 32, 128)
    p["w_f1"], p["b_f1"] = lin(keys[7], 640, 256)
    p["w_f2"], p["b_f2"] = lin(keys[8], 256, 128)
    p["w_f3"], p["b_f3"] = lin(keys[9], 128, num_classes)
    p["bw"] = jnp.ones((1, 3), jnp.float32)          # branch_weights = [1, 1, 1]
    return p


def _pack_params(params, K, num_classes):
    """Pack all weights/biases into 4 lane-aligned VMEM-resident operands."""
    f32, bf16 = jnp.float32, jnp.bfloat16
    assert num_classes <= NC_PAD
    S1 = F + K * F + RJ
    DIN = 3 + 3 * K + TRAJ_IN
    DIN_PAD = _round_up(DIN, 8)

    # Block-diagonal stem weight: [temporal | K x spatial | trajectory L1(pad 128)].
    w_stem = jnp.zeros((DIN_PAD, S1), f32)
    w_stem = w_stem.at[0:3, 0:F].set(params["w_tstem"])
    for k in range(K):
        w_stem = w_stem.at[3 + 3 * k:6 + 3 * k, F + k * F:F + (k + 1) * F].set(params["w_sstem"])
    w_stem = w_stem.at[3 + 3 * K:3 + 3 * K + TRAJ_IN, F + K * F:F + K * F + 64].set(params["w_tr1"])

    # 512-row weight pack: [ w_tproj | w_sproj ].
    w512 = jnp.concatenate([params["w_tproj"], params["w_sproj"]], axis=1)

    # 256-row weight pack (128-lane-aligned column blocks):
    #   [0,256)=Wf1_t*sm0  [256,512)=Wf1_s*sm1  [512,768)=Wf1_r*sm2 (rows 0:128)
    #   [768,896)=Wf2  [896,1024)=Wf3(pad)  [1024,1152)=Wtr2(pad)  [1152,1280)=Wtrproj(pad)
    sm = jax.nn.softmax(params["bw"][0].astype(f32))
    wf1 = params["w_f1"].astype(f32)
    w256 = jnp.zeros((256, 1280), f32)
    w256 = w256.at[:, 0:256].set(wf1[0:256, :] * sm[0])
    w256 = w256.at[:, 256:512].set(wf1[256:512, :] * sm[1])
    w256 = w256.at[0:128, 512:768].set(wf1[512:640, :] * sm[2])
    w256 = w256.at[:, 768:896].set(params["w_f2"])
    w256 = w256.at[0:128, 896:896 + num_classes].set(params["w_f3"])
    w256 = w256.at[0:64, 1024:1024 + 32].set(params["w_tr2"])
    w256 = w256.at[0:32, 1152:1280].set(params["w_trproj"])

    # All biases in one 128-lane-aligned f32 vector.
    b_all = jnp.zeros((1, S1 + 1280), f32)
    b_all = b_all.at[:, 0:F].set(params["b_tstem"])
    for k in range(K):
        b_all = b_all.at[:, F + k * F:F + (k + 1) * F].set(params["b_sstem"])
    b_all = b_all.at[:, F + K * F:F + K * F + 64].set(params["b_tr1"])
    b_all = b_all.at[:, S1:S1 + 32].set(params["b_tr2"])
    b_all = b_all.at[:, S1 + 128:S1 + 384].set(params["b_tproj"])
    b_all = b_all.at[:, S1 + 384:S1 + 640].set(params["b_sproj"])
    b_all = b_all.at[:, S1 + 640:S1 + 768].set(params["b_trproj"])
    b_all = b_all.at[:, S1 + 768:S1 + 1024].set(params["b_f1"])
    b_all = b_all.at[:, S1 + 1024:S1 + 1152].set(params["b_f2"])
    b_all = b_all.at[:, S1 + 1152:S1 + 1152 + num_classes].set(params["b_f3"])

    return w_stem.astype(bf16), w512.astype(bf16), w256.astype(bf16), b_all, DIN_PAD


def late_fusion_forward(video_clip, key_frames, trajectory_features, params,
                        *, block_b=256):
    f32 = jnp.float32
    B = video_clip.shape[0]
    K = key_frames.shape[1]
    num_classes = params["w_f3"].shape[1]

    # Backbone stand-in preprocessing (glue, plain JAX): global average pool.
    tvec = jnp.mean(video_clip, axis=(2, 3, 4)).astype(f32)                  # [B, 3]
    svec = jnp.mean(key_frames, axis=(3, 4)).reshape(B, K * 3).astype(f32)   # [B, K*3]
    traj = trajectory_features.astype(f32)                                   # [B, 12]
    x_in = jnp.concatenate([tvec, svec, traj], axis=1)                       # [B, 3+3K+12]

    w_stem, w512, w256, b_all, DIN_PAD = _pack_params(params, K, num_classes)
    if DIN_PAD != x_in.shape[1]:
        x_in = jnp.pad(x_in, [(0, 0), (0, DIN_PAD - x_in.shape[1])])

    # Batch tiling: tiles as large as the batch allows (fills the 256-row MXU
    # on v6e/v7x), capped at ~half the padded batch so the grid has >=2 steps
    # whenever possible (both v7x TensorCores get work via "parallel").
    B8 = _round_up(max(B, 8), 8)
    if B8 >= 16:
        TB = max(8, min(block_b, _round_up(B8 // 2, 8)))
    else:
        TB = B8
    B_pad = _round_up(B8, TB)
    if B_pad != B:
        x_in = jnp.pad(x_in, [(0, B_pad - B), (0, 0)])

    def resident(a):
        # Full-array block, constant index map -> stays VMEM-resident.
        zeros = (0,) * a.ndim
        return pl.BlockSpec(a.shape, lambda i, _z=zeros: _z)

    out = pl.pallas_call(
        functools.partial(late_fusion_kernel, K=K),
        out_shape=jax.ShapeDtypeStruct((B_pad, NC_PAD), jnp.float32),
        grid=(B_pad // TB,),
        in_specs=[pl.BlockSpec((TB, DIN_PAD), lambda i: (i, 0)),
                  resident(w_stem), resident(w512), resident(w256), resident(b_all)],
        out_specs=pl.BlockSpec((TB, NC_PAD), lambda i: (i, 0)),
        compiler_params=pltpu.CompilerParams(
            dimension_semantics=("parallel",),          # megacore split on v7x
            vmem_limit_bytes=32 * 1024 * 1024),
    )(x_in, w_stem, w512, w256, b_all)
    return out[:B, :num_classes]


def ref_forward(video_clip, key_frames, trajectory_features, params):
    # Pure f32 JAX reference (matches the PyTorch forward with the GAP+Linear
    # backbone stand-ins; dropout = identity).
    relu = lambda v: jnp.maximum(v, 0.0)
    B = video_clip.shape[0]
    K = key_frames.shape[1]
    tvec = jnp.mean(video_clip, axis=(2, 3, 4))
    svec = jnp.mean(key_frames, axis=(3, 4)).reshape(B * K, -1)

    t = relu(tvec @ params["w_tstem"] + params["b_tstem"])
    t = relu(t @ params["w_tproj"] + params["b_tproj"])

    s = relu(svec @ params["w_sstem"] + params["b_sstem"]).reshape(B, K, -1)
    s = jnp.mean(s, axis=1)
    s = relu(s @ params["w_sproj"] + params["b_sproj"])

    r = relu(trajectory_features @ params["w_tr1"] + params["b_tr1"])
    r = relu(r @ params["w_tr2"] + params["b_tr2"])
    r = relu(r @ params["w_trproj"] + params["b_trproj"])

    w = jax.nn.softmax(params["bw"][0])
    fused = jnp.concatenate([t * w[0], s * w[1], r * w[2]], axis=1)
    h = relu(fused @ params["w_f1"] + params["b_f1"])
    h = relu(h @ params["w_f2"] + params["b_f2"])
    return h @ params["w_f3"] + params["b_f3"]


if __name__ == "__main__":
    key = jax.random.PRNGKey(0)
    kv, kf, kt, kp = jax.random.split(key, 4)

    B, T, K, H, W = 2, 8, 4, 16, 16
    video_clip = jax.random.normal(kv, (B, 3, T, H, W), jnp.float32)   # N,C,T,H,W
    key_frames = jax.random.normal(kf, (B, K, 3, H, W), jnp.float32)   # N,K,C,H,W
    trajectory = jax.random.normal(kt, (B, TRAJ_IN), jnp.float32)      # N,12

    params = init_params(kp, NUM_CLASSES)

    out = late_fusion_forward(video_clip, key_frames, trajectory, params)
    out = jax.block_until_ready(out)

    ref = ref_forward(video_clip, key_frames, trajectory, params)
    assert out.shape == (B, NUM_CLASSES), out.shape
    # bf16 MXU operands vs. f32 reference: error stays ~1e-5..1e-4 absolute;
    # tolerance leaves headroom for bf16 operand rounding.
    assert jnp.allclose(out, ref, atol=1e-3, rtol=1e-2), (out, ref)

    print("KERNEL_OK")
</pallas_src>

<mosaic_0001>
module attributes {stable_mosaic.version = 11 : i64} {
  func.func @late_fusion_kernel(%arg0: i32, %arg1: memref<8x32xf32, #tpu.memory_space<vmem>>, %arg2: memref<32x2688xbf16, #tpu.memory_space<vmem>>, %arg3: memref<512x512xbf16, #tpu.memory_space<vmem>>, %arg4: memref<256x1280xbf16, #tpu.memory_space<vmem>>, %arg5: memref<1x3968xf32, #tpu.memory_space<vmem>>, %arg6: memref<8x128xf32, #tpu.memory_space<vmem>>) attributes {dimension_semantics = [#tpu.dimension_semantics<parallel>], iteration_bounds = array<i64: 1>, scalar_prefetch = 0 : i64, scratch_operands = 0 : i64, tpu.core_type = #tpu.core_type<tc>, window_params = [{transform_indices = @transform_0, window_bounds = array<i64: 8, 32>}, {pipeline_mode = #tpu.pipeline_mode<synchronous>, transform_indices = @transform_1, window_bounds = array<i64: 32, 2688>}, {pipeline_mode = #tpu.pipeline_mode<synchronous>, transform_indices = @transform_2, window_bounds = array<i64: 512, 512>}, {pipeline_mode = #tpu.pipeline_mode<synchronous>, transform_indices = @transform_3, window_bounds = array<i64: 256, 1280>}, {pipeline_mode = #tpu.pipeline_mode<synchronous>, transform_indices = @transform_4, window_bounds = array<i64: 1, 3968>}, {transform_indices = @transform_5, window_bounds = array<i64: 8, 128>}]} {
    %c0 = arith.constant 0 : index
    %c0_0 = arith.constant 0 : index
    %0 = vector.load %arg1[%c0, %c0_0] : memref<8x32xf32, #tpu.memory_space<vmem>>, vector<8x32xf32>
    %c0_1 = arith.constant 0 : index
    %c0_2 = arith.constant 0 : index
    %1 = vector.load %arg2[%c0_1, %c0_2] : memref<32x2688xbf16, #tpu.memory_space<vmem>>, vector<32x2688xbf16>
    %2 = arith.truncf %0 : vector<8x32xf32> to vector<8x32xbf16>
    %cst = arith.constant dense<0.000000e+00> : vector<8x2688xf32>
    %3 = tpu.matmul %2, %1, %cst {dimension_numbers = #tpu.dot_dimension_numbers<[1], [0], [0], [1], [0, 0, 1, 1], [], []>} : vector<8x32xbf16>, vector<32x2688xbf16>, vector<8x2688xf32> -> vector<8x2688xf32>
    %c0_3 = arith.constant 0 : index
    %c0_4 = arith.constant 0 : index
    %4 = vector.load %arg5[%c0_3, %c0_4] : memref<1x3968xf32, #tpu.memory_space<vmem>>, vector<1x2688xf32>
    %5 = vector.broadcast %4 : vector<1x2688xf32> to vector<8x2688xf32>
    %6 = arith.addf %3, %5 : vector<8x2688xf32>
    %cst_5 = arith.constant 0.000000e+00 : f32
    %7 = vector.broadcast %cst_5 : f32 to vector<8x2688xf32>
    %8 = arith.maximumf %6, %7 : vector<8x2688xf32>
    %9 = vector.extract_strided_slice %8 {offsets = [0, 0], sizes = [8, 512], strides = [1, 1]} : vector<8x2688xf32> to vector<8x512xf32>
    %10 = vector.extract_strided_slice %8 {offsets = [0, 512], sizes = [8, 512], strides = [1, 1]} : vector<8x2688xf32> to vector<8x512xf32>
    %11 = vector.extract_strided_slice %8 {offsets = [0, 1024], sizes = [8, 512], strides = [1, 1]} : vector<8x2688xf32> to vector<8x512xf32>
    %12 = arith.addf %10, %11 : vector<8x512xf32>
    %13 = vector.extract_strided_slice %8 {offsets = [0, 1536], sizes = [8, 512], strides = [1, 1]} : vector<8x2688xf32> to vector<8x512xf32>
    %14 = arith.addf %12, %13 : vector<8x512xf32>
    %15 = vector.extract_strided_slice %8 {offsets = [0, 2048], sizes = [8, 512], strides = [1, 1]} : vector<8x2688xf32> to vector<8x512xf32>
    %16 = arith.addf %14, %15 : vector<8x512xf32>
    %cst_6 = arith.constant 2.500000e-01 : f32
    %17 = vector.broadcast %cst_6 : f32 to vector<8x512xf32>
    %18 = arith.mulf %16, %17 : vector<8x512xf32>
    %19 = vector.extract_strided_slice %8 {offsets = [0, 2560], sizes = [8, 128], strides = [1, 1]} : vector<8x2688xf32> to vector<8x128xf32>
    %c0_7 = arith.constant 0 : index
    %c1024 = arith.constant 1024 : index
    %20 = vector.load %arg4[%c0_7, %c1024] : memref<256x1280xbf16, #tpu.memory_space<vmem>>, vector<128x128xbf16>
    %21 = arith.truncf %19 : vector<8x128xf32> to vector<8x128xbf16>
    %cst_8 = arith.constant dense<0.000000e+00> : vector<8x128xf32>
    %22 = tpu.matmul %21, %20, %cst_8 {dimension_numbers = #tpu.dot_dimension_numbers<[1], [0], [0], [1], [0, 0, 1, 1], [], []>} : vector<8x128xbf16>, vector<128x128xbf16>, vector<8x128xf32> -> vector<8x128xf32>
    %c0_9 = arith.constant 0 : index
    %c2688 = arith.constant 2688 : index
    %23 = vector.load %arg5[%c0_9, %c2688] : memref<1x3968xf32, #tpu.memory_space<vmem>>, vector<1x128xf32>
    %24 = vector.broadcast %23 : vector<1x128xf32> to vector<8x128xf32>
    %25 = arith.addf %22, %24 : vector<8x128xf32>
    %cst_10 = arith.constant 0.000000e+00 : f32
    %26 = vector.broadcast %cst_10 : f32 to vector<8x128xf32>
    %27 = arith.maximumf %25, %26 : vector<8x128xf32>
    %c0_11 = arith.constant 0 : index
    %c1152 = arith.constant 1152 : index
    %28 = vector.load %arg4[%c0_11, %c1152] : memref<256x1280xbf16, #tpu.memory_space<vmem>>, vector<128x128xbf16>
    %29 = arith.truncf %27 : vector<8x128xf32> to vector<8x128xbf16>
    %cst_12 = arith.constant dense<0.000000e+00> : vector<8x128xf32>
    %30 = tpu.matmul %29, %28, %cst_12 {dimension_numbers = #tpu.dot_dimension_numbers<[1], [0], [0], [1], [0, 0, 1, 1], [], []>} : vector<8x128xbf16>, vector<128x128xbf16>, vector<8x128xf32> -> vector<8x128xf32>
    %c0_13 = arith.constant 0 : index
    %c3328 = arith.constant 3328 : index
    %31 = vector.load %arg5[%c0_13, %c3328] : memref<1x3968xf32, #tpu.memory_space<vmem>>, vector<1x128xf32>
    %32 = vector.broadcast %31 : vector<1x128xf32> to vector<8x128xf32>
    %33 = arith.addf %30, %32 : vector<8x128xf32>
    %cst_14 = arith.constant 0.000000e+00 : f32
    %34 = vector.broadcast %cst_14 : f32 to vector<8x128xf32>
    %35 = arith.maximumf %33, %34 : vector<8x128xf32>
    %c0_15 = arith.constant 0 : index
    %c0_16 = arith.constant 0 : index
    %36 = vector.load %arg3[%c0_15, %c0_16] : memref<512x512xbf16, #tpu.memory_space<vmem>>, vector<512x256xbf16>
    %37 = arith.truncf %9 : vector<8x512xf32> to vector<8x512xbf16>
    %cst_17 = arith.constant dense<0.000000e+00> : vector<8x256xf32>
    %38 = tpu.matmul %37, %36, %cst_17 {dimension_numbers = #tpu.dot_dimension_numbers<[1], [0], [0], [1], [0, 0, 1, 1], [], []>} : vector<8x512xbf16>, vector<512x256xbf16>, vector<8x256xf32> -> vector<8x256xf32>
    %c0_18 = arith.constant 0 : index
    %c2816 = arith.constant 2816 : index
    %39 = vector.load %arg5[%c0_18, %c2816] : memref<1x3968xf32, #tpu.memory_space<vmem>>, vector<1x256xf32>
    %40 = vector.broadcast %39 : vector<1x256xf32> to vector<8x256xf32>
    %41 = arith.addf %38, %40 : vector<8x256xf32>
    %cst_19 = arith.constant 0.000000e+00 : f32
    %42 = vector.broadcast %cst_19 : f32 to vector<8x256xf32>
    %43 = arith.maximumf %41, %42 : vector<8x256xf32>
    %c0_20 = arith.constant 0 : index
    %c256 = arith.constant 256 : index
    %44 = vector.load %arg3[%c0_20, %c256] : memref<512x512xbf16, #tpu.memory_space<vmem>>, vector<512x256xbf16>
    %45 = arith.truncf %18 : vector<8x512xf32> to vector<8x512xbf16>
    %cst_21 = arith.constant dense<0.000000e+00> : vector<8x256xf32>
    %46 = tpu.matmul %45, %44, %cst_21 {dimension_numbers = #tpu.dot_dimension_numbers<[1], [0], [0], [1], [0, 0, 1, 1], [], []>} : vector<8x512xbf16>, vector<512x256xbf16>, vector<8x256xf32> -> vector<8x256xf32>
    %c0_22 = arith.constant 0 : index
    %c3072 = arith.constant 3072 : index
    %47 = vector.load %arg5[%c0_22, %c3072] : memref<1x3968xf32, #tpu.memory_space<vmem>>, vector<1x256xf32>
    %48 = vector.broadcast %47 : vector<1x256xf32> to vector<8x256xf32>
    %49 = arith.addf %46, %48 : vector<8x256xf32>
    %cst_23 = arith.constant 0.000000e+00 : f32
    %50 = vector.broadcast %cst_23 : f32 to vector<8x256xf32>
    %51 = arith.maximumf %49, %50 : vector<8x256xf32>
    %c0_24 = arith.constant 0 : index
    %c0_25 = arith.constant 0 : index
    %52 = vector.load %arg4[%c0_24, %c0_25] : memref<256x1280xbf16, #tpu.memory_space<vmem>>, vector<256x256xbf16>
    %53 = arith.truncf %43 : vector<8x256xf32> to vector<8x256xbf16>
    %cst_26 = arith.constant dense<0.000000e+00> : vector<8x256xf32>
    %54 = tpu.matmul %53, %52, %cst_26 {dimension_numbers = #tpu.dot_dimension_numbers<[1], [0], [0], [1], [0, 0, 1, 1], [], []>} : vector<8x256xbf16>, vector<256x256xbf16>, vector<8x256xf32> -> vector<8x256xf32>
    %c0_27 = arith.constant 0 : index
    %c256_28 = arith.constant 256 : index
    %55 = vector.load %arg4[%c0_27, %c256_28] : memref<256x1280xbf16, #tpu.memory_space<vmem>>, vector<256x256xbf16>
    %56 = arith.truncf %51 : vector<8x256xf32> to vector<8x256xbf16>
    %cst_29 = arith.constant dense<0.000000e+00> : vector<8x256xf32>
    %57 = tpu.matmul %56, %55, %cst_29 {dimension_numbers = #tpu.dot_dimension_numbers<[1], [0], [0], [1], [0, 0, 1, 1], [], []>} : vector<8x256xbf16>, vector<256x256xbf16>, vector<8x256xf32> -> vector<8x256xf32>
    %58 = arith.addf %54, %57 : vector<8x256xf32>
    %c0_30 = arith.constant 0 : index
    %c512 = arith.constant 512 : index
    %59 = vector.load %arg4[%c0_30, %c512] : memref<256x1280xbf16, #tpu.memory_space<vmem>>, vector<128x256xbf16>
    %60 = arith.truncf %35 : vector<8x128xf32> to vector<8x128xbf16>
    %cst_31 = arith.constant dense<0.000000e+00> : vector<8x256xf32>
    %61 = tpu.matmul %60, %59, %cst_31 {dimension_numbers = #tpu.dot_dimension_numbers<[1], [0], [0], [1], [0, 0, 1, 1], [], []>} : vector<8x128xbf16>, vector<128x256xbf16>, vector<8x256xf32> -> vector<8x256xf32>
    %62 = arith.addf %58, %61 : vector<8x256xf32>
    %c0_32 = arith.constant 0 : index
    %c3456 = arith.constant 3456 : index
    %63 = vector.load %arg5[%c0_32, %c3456] : memref<1x3968xf32, #tpu.memory_space<vmem>>, vector<1x256xf32>
    %64 = vector.broadcast %63 : vector<1x256xf32> to vector<8x256xf32>
    %65 = arith.addf %62, %64 : vector<8x256xf32>
    %cst_33 = arith.constant 0.000000e+00 : f32
    %66 = vector.broadcast %cst_33 : f32 to vector<8x256xf32>
    %67 = arith.maximumf %65, %66 : vector<8x256xf32>
    %c0_34 = arith.constant 0 : index
    %c768 = arith.constant 768 : index
    %68 = vector.load %arg4[%c0_34, %c768] : memref<256x1280xbf16, #tpu.memory_space<vmem>>, vector<256x128xbf16>
    %69 = arith.truncf %67 : vector<8x256xf32> to vector<8x256xbf16>
    %cst_35 = arith.constant dense<0.000000e+00> : vector<8x128xf32>
    %70 = tpu.matmul %69, %68, %cst_35 {dimension_numbers = #tpu.dot_dimension_numbers<[1], [0], [0], [1], [0, 0, 1, 1], [], []>} : vector<8x256xbf16>, vector<256x128xbf16>, vector<8x128xf32> -> vector<8x128xf32>
    %c0_36 = arith.constant 0 : index
    %c3712 = arith.constant 3712 : index
    %71 = vector.load %arg5[%c0_36, %c3712] : memref<1x3968xf32, #tpu.memory_space<vmem>>, vector<1x128xf32>
    %72 = vector.broadcast %71 : vector<1x128xf32> to vector<8x128xf32>
    %73 = arith.addf %70, %72 : vector<8x128xf32>
    %cst_37 = arith.constant 0.000000e+00 : f32
    %74 = vector.broadcast %cst_37 : f32 to vector<8x128xf32>
    %75 = arith.maximumf %73, %74 : vector<8x128xf32>
    %c0_38 = arith.constant 0 : index
    %c896 = arith.constant 896 : index
    %76 = vector.load %arg4[%c0_38, %c896] : memref<256x1280xbf16, #tpu.memory_space<vmem>>, vector<128x128xbf16>
    %77 = arith.truncf %75 : vector<8x128xf32> to vector<8x128xbf16>
    %cst_39 = arith.constant dense<0.000000e+00> : vector<8x128xf32>
    %78 = tpu.matmul %77, %76, %cst_39 {dimension_numbers = #tpu.dot_dimension_numbers<[1], [0], [0], [1], [0, 0, 1, 1], [], []>} : vector<8x128xbf16>, vector<128x128xbf16>, vector<8x128xf32> -> vector<8x128xf32>
    %c0_40 = arith.constant 0 : index
    %c3840 = arith.constant 3840 : index
    %79 = vector.load %arg5[%c0_40, %c3840] : memref<1x3968xf32, #tpu.memory_space<vmem>>, vector<1x128xf32>
    %80 = vector.broadcast %79 : vector<1x128xf32> to vector<8x128xf32>
    %81 = arith.addf %78, %80 : vector<8x128xf32>
    %c0_41 = arith.constant 0 : index
    %c0_42 = arith.constant 0 : index
    %82 = vector.load %arg6[%c0_41, %c0_42] : memref<8x128xf32, #tpu.memory_space<vmem>>, vector<8x128xf32>
    tpu.vector_store %arg6[%c0_41, %c0_42], %81 {strides = array<i32>} : memref<8x128xf32, #tpu.memory_space<vmem>>, vector<8x128xf32>,
    return
  }
  func.func @transform_0(%arg0: i32) -> (i32, i32) {
    %c0_i32 = arith.constant 0 : i32
    %c0_i32_0 = arith.constant 0 : i32
    return %arg0, %c0_i32 : i32, i32
  }
  func.func @transform_1(%arg0: i32) -> (i32, i32) {
    %c0_i32 = arith.constant 0 : i32
    %c0_i32_0 = arith.constant 0 : i32
    %c0_i32_1 = arith.constant 0 : i32
    return %c0_i32, %c0_i32_0 : i32, i32
  }
  func.func @transform_2(%arg0: i32) -> (i32, i32) {
    %c0_i32 = arith.constant 0 : i32
    %c0_i32_0 = arith.constant 0 : i32
    %c0_i32_1 = arith.constant 0 : i32
    return %c0_i32, %c0_i32_0 : i32, i32
  }
  func.func @transform_3(%arg0: i32) -> (i32, i32) {
    %c0_i32 = arith.constant 0 : i32
    %c0_i32_0 = arith.constant 0 : i32
    %c0_i32_1 = arith.constant 0 : i32
    return %c0_i32, %c0_i32_0 : i32, i32
  }
  func.func @transform_4(%arg0: i32) -> (i32, i32) {
    %c0_i32 = arith.constant 0 : i32
    %c0_i32_0 = arith.constant 0 : i32
    %c0_i32_1 = arith.constant 0 : i32
    return %c0_i32, %c0_i32_0 : i32, i32
  }
  func.func @transform_5(%arg0: i32) -> (i32, i32) {
    %c0_i32 = arith.constant 0 : i32
    %c0_i32_0 = arith.constant 0 : i32
    return %arg0, %c0_i32 : i32, i32
  }
}

</mosaic_0001>

<bundles_post_ra>
// kernel: tpu_custom_call.1
= control target key start
LH: loop header
LB: loop body
LE: loop exit
PB: predicated region body
PF: predicated region fallthrough
CT: control target
= control target key end

     0   :  { %10 = vsyncpa [#allocation3], 0  ;;  %s4367_s0 = inlined_call_operand.hbm [shape: f32[8,32], index: 0, kind: input, shape index: {}]   ;;  %s4368_s1 = inlined_call_operand.hbm [shape: bf16[32,2688], index: 1, kind: input, shape index: {}]   ;;  %s4369_s2 = inlined_call_operand.hbm [shape: bf16[512,512], index: 2, kind: input, shape index: {}]   ;;  %s4370_s3 = inlined_call_operand.hbm [shape: bf16[256,1280], index: 3, kind: input, shape index: {}]   ;;  %s4371_s4 = inlined_call_operand.hbm [shape: f32[1,3968], index: 4, kind: input, shape index: {}]   ;;  %s4372_s5 = inlined_call_operand.hbm [shape: f32[8,128], index: 5, kind: output, shape index: {}]  }
   0x1   :  { %11 = vsyncpa [#allocation6], 0 }
   0x2   :  { %12 = vsyncpa [#allocation9], 0 }
   0x3   :  { %13 = vsyncpa [#allocation4], 0  ;;  %s4080_s18 = smov [#allocation5]   ;;  %s3940_s22 = scalar_lea.hbm %s4368_s1, 5376 }
   0x4   :  { %s29_s19 = sshll.u32 %s4080_s18, 4  ;;  %p3941_p0 = scmp.ne.s32.totalorder %s4368_s1, %s3940_s22  ;;  %s30_s19 = int_to_ptr.vmem [resolvable:$true] %s29_s19 }
   0x5   :  { %p3944_p1 = scmp.lt.u32.totalorder %s3940_s22, %s4368_s1 }
   0x7   :  { %p3946_p2 = pnand %p3944_p1, %p3941_p0 }
   0x9   :  { %3949 = shalt.err (!%p3946_p2)
}
   0xa   :  { %s3950_s27 = scalar_lea.vmem %s30_s19, 5376  ;;  %p3955_p4 = scmp.lt.s32.totalorder %s30_s19, %s30_s19 }
   0xb   :  { %p3951_p3 = scmp.ne.s32.totalorder %s30_s19, %s3950_s27  ;;  %p3956_p5 = scmp.lt.s32.totalorder %s3950_s27, %s3950_s27 }
   0xd   :  { %p3957_p6 = por %p3956_p5, %p3955_p4 }
   0xf   :  { %p3958_p7 = pnand %p3957_p6, %p3951_p3 }
  0x11   :  { %3961 = shalt.err (!%p3958_p7)
}
  0x12   :  { %s4081_s28 = smov 1344   ;;  %s4082_s29 = smov 84  }
  0x13   :  { %35 = dma.hbm_to_vmem [thread:$0]  %s4368_s1, 5376, %s30_s19, [#allocation6], %s4081_s28, %s4081_s28, %s4082_s29  }
  0x14   :  { %s4083_s7 = smov [#allocation8]   ;;  %s3962_s11 = scalar_lea.hbm %s4370_s3, 20480 }
  0x15   :  { %s53_s8 = sshll.u32 %s4083_s7, 4  ;;  %p3963_p8 = scmp.ne.s32.totalorder %s4370_s3, %s3962_s11  ;;  %s54_s8 = int_to_ptr.vmem [resolvable:$true] %s53_s8 }
  0x16   :  { %p3966_p9 = scmp.lt.u32.totalorder %s3962_s11, %s4370_s3 }
  0x18   :  { %p3968_p10 = pnand %p3966_p9, %p3963_p8 }
  0x1a   :  { %3971 = shalt.err (!%p3968_p10)
}
  0x1b   :  { %s3972_s16 = scalar_lea.vmem %s54_s8, 20480  ;;  %p3977_p12 = scmp.lt.s32.totalorder %s54_s8, %s54_s8 }
  0x1c   :  { %p3973_p11 = scmp.ne.s32.totalorder %s54_s8, %s3972_s16  ;;  %p3978_p13 = scmp.lt.s32.totalorder %s3972_s16, %s3972_s16 }
  0x1e   :  { %p3979_p0 = por %p3978_p13, %p3977_p12 }
  0x20   :  { %p3980_p1 = pnand %p3979_p0, %p3973_p11 }
  0x22   :  { %3983 = shalt.err (!%p3980_p1)
}
  0x23   :  { %s4084_s1 = smov 640   ;;  %s4085_s17 = smov 40  }
  0x24   :  { %59 = dma.hbm_to_vmem [thread:$0]  %s4370_s3, 20480, %s54_s8, [#allocation9], %s4084_s1, %s4084_s1, %s4085_s17  }
  0x25   :  { %s4086_s20 = smov [#allocation2]   ;;  %s4087_s22 = smov [#allocation7]  }
  0x26   :  { %s20_s21 = sshll.u32 %s4086_s20, 4  ;;  %s41_s23 = sshll.u32 %s4087_s22, 4  ;;  %s21_s21 = int_to_ptr.vmem [resolvable:$true] %s20_s21  ;;  %s4149_s23 = int_to_ptr.vmem [resolvable:$true] %s41_s23 }
  0x27   :  { %s3984_s26 = scalar_lea.hbm %s4367_s0, 128 }
  0x28   :  { %p3985_p2 = scmp.ne.s32.totalorder %s4367_s0, %s3984_s26  ;;  %p3988_p3 = scmp.lt.u32.totalorder %s3984_s26, %s4367_s0 }
  0x2a   :  { %p3990_p4 = pnand %p3988_p3, %p3985_p2 }
  0x2c   :  { %3993 = shalt.err (!%p3990_p4)
}
  0x2d   :  { %s3994_s3 = scalar_lea.vmem %s21_s21, 128  ;;  %p3999_p6 = scmp.lt.s32.totalorder %s21_s21, %s21_s21 }
  0x2e   :  { %p3995_p5 = scmp.ne.s32.totalorder %s21_s21, %s3994_s3  ;;  %p4000_p7 = scmp.lt.s32.totalorder %s3994_s3, %s3994_s3 }
  0x30   :  { %p4001_p8 = por %p4000_p7, %p3999_p6 }
  0x32   :  { %p4002_p9 = pnand %p4001_p8, %p3995_p5 }
  0x34   :  { %4005 = shalt.err (!%p4002_p9)
}
  0x35   :  { %23 = dma.hbm_to_vmem [thread:$0]  %s4367_s0, 128, %s21_s21, [#allocation3]  }
  0x36   :  { %s4006_s10 = scalar_lea.hbm %s4369_s2, 16384 }
  0x37   :  { %p4007_p10 = scmp.ne.s32.totalorder %s4369_s2, %s4006_s10  ;;  %p4010_p11 = scmp.lt.u32.totalorder %s4006_s10, %s4369_s2 }
  0x39   :  { %p4012_p12 = pnand %p4010_p11, %p4007_p10 }
  0x3b   :  { %4015 = shalt.err (!%p4012_p12)
}
  0x3c   :  { %s4016_s15 = scalar_lea.vmem %s4149_s23, 16384  ;;  %p4021_p0 = scmp.lt.s32.totalorder %s4149_s23, %s4149_s23 }
  0x3d   :  { %p4017_p13 = scmp.ne.s32.totalorder %s4149_s23, %s4016_s15  ;;  %p4022_p1 = scmp.lt.s32.totalorder %s4016_s15, %s4016_s15 }
  0x3f   :  { %p4023_p2 = por %p4022_p1, %p4021_p0 }
  0x41   :  { %p4024_p3 = pnand %p4023_p2, %p4017_p13 }
  0x43   :  { %4027 = shalt.err (!%p4024_p3)
}
  0x44   :  { %s4088_s0 = smov 256   ;;  %s4089_s16 = smov 16  }
  0x45   :  { %47 = dma.hbm_to_vmem [thread:$0]  %s4369_s2, 16384, %s4149_s23, [#allocation6], %s4088_s0, %s4088_s0, %s4089_s16  }
  0x46   :  { %s4090_s18 = smov [#allocation10]   ;;  %s4028_s22 = scalar_lea.hbm %s4371_s4, 496 }
  0x47   :  { %s66_s19 = sshll.u32 %s4090_s18, 4  ;;  %p4029_p4 = scmp.ne.s32.totalorder %s4371_s4, %s4028_s22  ;;  %s67_s19 = int_to_ptr.vmem [resolvable:$true] %s66_s19 }
  0x48   :  { %p4032_p5 = scmp.lt.u32.totalorder %s4028_s22, %s4371_s4 }
  0x4a   :  { %p4034_p6 = pnand %p4032_p5, %p4029_p4 }
  0x4c   :  { %4037 = shalt.err (!%p4034_p6)
}
  0x4d   :  { %s4038_s28 = scalar_lea.vmem %s67_s19, 496  ;;  %s4042_s2 = scalar_lea.vmem %s67_s19, 512 }
  0x4e   :  { %p4039_p7 = scmp.ne.s32.totalorder %s67_s19, %s4038_s28  ;;  %p4043_p8 = scmp.lt.s32.totalorder %s67_s19, %s67_s19 }
  0x4f   :  { %p4044_p9 = scmp.lt.s32.totalorder %s4042_s2, %s4038_s28 }
  0x51   :  { %p4045_p10 = por %p4044_p9, %p4043_p8 }
  0x53   :  { %p4046_p11 = pnand %p4045_p10, %p4039_p7 }
  0x55   :  { %4049 = shalt.err (!%p4046_p11)
}
  0x56   :  { %69 = dma.hbm_to_vmem [thread:$0]  %s4371_s4, 496, %s67_s19, [#allocation9]  }
  0x57   :  { %4072 = dma.done.wait [#allocation3], 128  }
  0x58   :  { %4073 = vsyncadd [#allocation3], 4294967168 }
  0x59   :  { %4074 = dma.done.wait [#allocation6], 21760  }
  0x5a   :  { %4075 = vsyncadd [#allocation6], 4294945536 }
  0x5b   :  { %4076 = dma.done.wait [#allocation9], 20976  }
  0x5c   :  { %4077 = vsyncadd [#allocation9], 4294946320  ;;  %v4091_v0 = vmov 0   ;;  %v3526_v1 = vld [vmem:[#allocation5 + $0x4] ss:$84 sps:$4 sm:$0xff]   ;;  %vm455_vm0 = vcmask 261120   ;;  %v138_v58 = vlaneseq }
  0x5d   :  { %491 = vmatprep.mubr.bf16.mxu0 %v4091_v0  ;;  %614 = vmatprep.mubr.bf16.mxu1 %v4091_v0  ;;  %v3528_v2 = vld [vmem:[#allocation5] ss:$84 sps:$4 sm:$0xff]   ;;  %v3531_v4 = vld [vmem:[#allocation5 + $0xa8] ss:$84 sps:$4 sm:$0xff]   ;;  %v3535_v10 = vld [vmem:[#allocation5 + $0xb0] ss:$84 sps:$4 sm:$0xff]  }
  0x5e   :  { %459 = vmatprep.subr.bf16.mxu0 %v3526_v1  ;;  %v3529_v3 = vld [vmem:[#allocation5 + $0xac] ss:$84 sps:$4 sm:$0xff]   ;;  %v86_v5 = vld [vmem:[#allocation2] sm:$0xff]  ;;  %v3537_v9 = vld [vmem:[#allocation5 + $0xb4] ss:$84 sps:$4 sm:$0xff]   ;;  %v4092_v42 = vmov 0.0  }
  0x5f   :  { %460 = vmatpush1.bf16.msra.mxu0 %v3528_v2  ;;  %v3534_v6 = vld [vmem:[#allocation5 + $0xc] ss:$84 sps:$4 sm:$0xff]   ;;  %v4194_v7 = vpack.c.bf16 %v86_v5, %v86_v5  ;;  %v3532_v8 = vld [vmem:[#allocation5 + $0x8] ss:$84 sps:$4 sm:$0xff]   ;;  %v3538_v12 = vld [vmem:[#allocation5 + $0x10] ss:$84 sps:$4 sm:$0xff]  }
  0x60   :  { %461 = vmatprep.subr.bf16.mxu0 %v3529_v3  ;;  %v3540_v11 = vld [vmem:[#allocation5 + $0x14] ss:$84 sps:$4 sm:$0xff]   ;;  %v3543_v13 = vld [vmem:[#allocation5 + $0xbc] ss:$84 sps:$4 sm:$0xff]   ;;  %v3541_v14 = vld [vmem:[#allocation5 + $0xb8] ss:$84 sps:$4 sm:$0xff]  }
  0x61   :  { %v3564_v15 = vld [vmem:[#allocation5 + $0x1c] ss:$84 sps:$4 sm:$0xff]   ;;  %v3566_v16 = vld [vmem:[#allocation5 + $0x18] ss:$84 sps:$4 sm:$0xff]   ;;  %v3569_v19 = vld [vmem:[#allocation5 + $0xc0] ss:$84 sps:$4 sm:$0xff]  }
  0x62   :  { %v3546_v17 = vld [vmem:[#allocation5 + $0x24] ss:$84 sps:$4 sm:$0xff]   ;;  %582 = vmatprep.subr.bf16.mxu1 %v3564_v15  ;;  %v3544_v20 = vld [vmem:[#allocation5 + $0x20] ss:$84 sps:$4 sm:$0xff]   ;;  %v3570_v23 = vld [vmem:[#allocation5 + $0x28] ss:$84 sps:$4 sm:$0xff]  }
  0x63   :  { %462 = vmatpush1.bf16.msra.mxu0 %v3531_v4  ;;  %v3567_v18 = vld [vmem:[#allocation5 + $0xc4] ss:$84 sps:$4 sm:$0xff]   ;;  %583 = vmatpush1.bf16.msra.mxu1 %v3566_v16  ;;  %v3549_v21 = vld [vmem:[#allocation5 + $0xcc] ss:$84 sps:$4 sm:$0xff]   ;;  %v3547_v24 = vld [vmem:[#allocation5 + $0xc8] ss:$84 sps:$4 sm:$0xff]  }
  0x64   :  { %500 = vmatprep.subr.bf16.mxu0 %v3534_v6  ;;  %584 = vmatprep.subr.bf16.mxu1 %v3567_v18  ;;  %v3572_v22 = vld [vmem:[#allocation5 + $0x2c] ss:$84 sps:$4 sm:$0xff]   ;;  %v3552_v25 = vld [vmem:[#allocation5 + $0x34] ss:$84 sps:$4 sm:$0xff]   ;;  %v3573_v27 = vld [vmem:[#allocation5 + $0xd0] ss:$84 sps:$4 sm:$0xff]  }
  0x65   :  { %v3575_v26 = vld [vmem:[#allocation5 + $0xd4] ss:$84 sps:$4 sm:$0xff]   ;;  %v3550_v28 = vld [vmem:[#allocation5 + $0x30] ss:$84 sps:$4 sm:$0xff]   ;;  %v3576_v31 = vld [vmem:[#allocation5 + $0x38] ss:$84 sps:$4 sm:$0xff]  }
  0x66   :  { %3116 = vmatmul.mubr.msk.bf16.vlgmr.msra.gmra.mrb[0].mxu0 %vm455_vm0, %v4194_v7  ;;  %v3555_v29 = vld [vmem:[#allocation5 + $0xdc] ss:$84 sps:$4 sm:$0xff]   ;;  %v3553_v32 = vld [vmem:[#allocation5 + $0xd8] ss:$84 sps:$4 sm:$0xff]   ;;  %v3579_v35 = vld [vmem:[#allocation5 + $0xe0] ss:$84 sps:$4 sm:$0xff]  }
  0x67   :  { %501 = vmatpush1.bf16.msra.mxu0 %v3532_v8  ;;  %532 = vmatprep.mubr.bf16.mxu0 %v4091_v0  ;;  %v3578_v30 = vld [vmem:[#allocation5 + $0x3c] ss:$84 sps:$4 sm:$0xff]   ;;  %v3581_v33 = vld [vmem:[#allocation5 + $0xe4] ss:$84 sps:$4 sm:$0xff]   ;;  %v3556_v36 = vld [vmem:[#allocation5 + $0x40] ss:$84 sps:$4 sm:$0xff]  }
  0x68   :  { %502 = vmatprep.subr.bf16.mxu0 %v3537_v9  ;;  %585 = vmatpush1.bf16.msra.mxu1 %v3569_v19  ;;  %v3558_v34 = vld [vmem:[#allocation5 + $0x44] ss:$84 sps:$4 sm:$0xff]   ;;  %v3561_v37 = vld [vmem:[#allocation5 + $0xec] ss:$84 sps:$4 sm:$0xff]   ;;  %v3582_v39 = vld [vmem:[#allocation5 + $0x48] ss:$84 sps:$4 sm:$0xff]  }
  0x69   :  { %664 = vmatprep.subr.bf16.mxu1 %v3572_v22  ;;  %v3584_v38 = vld [vmem:[#allocation5 + $0x4c] ss:$84 sps:$4 sm:$0xff]   ;;  %v3559_v40 = vld [vmem:[#allocation5 + $0xe8] ss:$84 sps:$4 sm:$0xff]   ;;  %v3562_v41 = vld [vmem:[#allocation5 + $0x50] ss:$84 sps:$4 sm:$0xff]  }
  0x6a   :  { %v3563_v43 = vld [vmem:[#allocation5 + $0xf8] ss:$84 sps:$4 sm:$0xff]   ;;  %vm4093_vm1 = vmmov 0   ;;  %v3587_v44 = vld [vmem:[#allocation5 + $0xf4] ss:$84 sps:$4 sm:$0xff]   ;;  %v4247_v60 = vshrl.u32 %v138_v58, 7 }
  0x6b   :  { %503 = vmatpush1.bf16.msra.mxu0 %v3535_v10  ;;  %3119 = vmatmul.mubr.msk.bf16.vlgmr.msra.gmra.mrb[0].mxu1 %vm455_vm0, %v4194_v7  ;;  %v3585_v45 = vld [vmem:[#allocation5 + $0xf0] ss:$84 sps:$4 sm:$0xff]   ;;  %v3589_v47 = vld [vmem:[#allocation8 + $0x70] ss:$40 sps:$4 sm:$0xff]   ;;  %v4258_v10 = vld [vmem:[#allocation10 + $0x8] sm:$0xff]  ;;  %s4094_s4 = smov [#allocation11]  }
  0x6c   :  { %541 = vmatprep.subr.bf16.mxu0 %v3540_v11  ;;  %665 = vmatpush1.bf16.msra.mxu1 %v3570_v23  ;;  %v3588_v46 = vld [vmem:[#allocation8 + $0x20] ss:$40 sps:$4 sm:$0xff]   ;;  %v3591_v49 = vld [vmem:[#allocation8 + $0x110] ss:$40 sps:$4 sm:$0xff]   ;;  %v3598_v54 = vld [vmem:[#allocation7 + $0x4] ss:$16 sps:$4 sm:$0xff]  }
  0x6d   :  { %696 = vmatprep.mubr.bf16.mxu1 %v4091_v0  ;;  %666 = vmatprep.subr.bf16.mxu1 %v3575_v26  ;;  %v3590_v48 = vld [vmem:[#allocation8 + $0xc0] ss:$40 sps:$4 sm:$0xff]   ;;  %v3593_v51 = vld [vmem:[#allocation8 + $0x1b0] ss:$40 sps:$4 sm:$0xff]   ;;  %v156_v63 = vsub.s32 4, %v4247_v60  ;;  %v160_v6 = vsub.s32 5, %v4247_v60 }
  0x6e   :  { %3117 = vmatmul.mubr.msk.bf16.vlgmr.msra.gmra.mrb[4].mxu0 %vm455_vm0, %v4194_v7  ;;  %v3592_v50 = vld [vmem:[#allocation8 + $0x160] ss:$40 sps:$4 sm:$0xff]   ;;  %v3595_v53 = vld [vmem:[#allocation8 + $0x250] ss:$40 sps:$4 sm:$0xff]   ;;  %v4261_v11 = vsub.s32 0, %v4247_v60  ;;  %s3063_s30 = sshll.u32 %s4094_s4, 4  ;;  %s3064_s30 = int_to_ptr.vmem [resolvable:$true] %s3063_s30 }
  0x6f   :  { %542 = vmatpush1.bf16.msra.mxu0 %v3538_v12  ;;  %573 = vmatprep.mubr.bf16.mxu0 %v4091_v0  ;;  %v3594_v52 = vld [vmem:[#allocation8 + $0x200] ss:$40 sps:$4 sm:$0xff]   ;;  %s4050_s3 = scalar_lea.vmem %s3064_s30, 128  ;;  %p4055_p13 = scmp.lt.s32.totalorder %s3064_s30, %s3064_s30 }
  0x70   :  { %543 = vmatprep.subr.bf16.mxu0 %v3543_v13  ;;  %667 = vmatpush1.bf16.msra.mxu1 %v3573_v27  ;;  %v4254_v3 = vld [vmem:[#allocation10] sm:$0xff]  ;;  %v4264_v13 = vsub.s32 1, %v4247_v60  ;;  %v173_v15 = vrot.slane %v4258_v10, %v4261_v11  ;;  %p4051_p12 = scmp.ne.s32.totalorder %s3064_s30, %s4050_s3  ;;  %p4056_p0 = scmp.lt.s32.totalorder %s4050_s3, %s4050_s3 }
  0x71   :  { %746 = vmatprep.subr.bf16.mxu1 %v3578_v30  ;;  %v157_v4 = vrot.slane %v4254_v3, %v156_v63 }
  0x72   :  { %v177_v16 = vrot.slane %v4258_v10, %v4264_v13  ;;  %p4057_p1 = por %p4056_p0, %p4055_p13 }
  0x73   :  { %544 = vmatpush1.bf16.msra.mxu0 %v3541_v14  ;;  %3121 = vmatmul.mubr.msk.bf16.vlgmr.msra.gmra.mrb[4].mxu1 %vm455_vm0, %v4194_v7  ;;  %v161_v14 = vrot.slane %v4254_v3, %v160_v6 }
  0x74   :  { %623 = vmatprep.subr.bf16.mxu0 %v3546_v17  ;;  %747 = vmatpush1.bf16.msra.mxu1 %v3576_v31  ;;  %v193_v31 = vrot.slane %v4258_v10, %v160_v6  ;;  %p4058_p2 = pnand %p4057_p1, %p4051_p12 }
  0x75   :  { %778 = vmatprep.mubr.bf16.mxu1 %v4091_v0  ;;  %748 = vmatprep.subr.bf16.mxu1 %v3581_v33 }
  0x76   :  { %3118 = vmatmul.mubr.msk.bf16.vlgmr.msra.gmra.mrb[8].mxu0 %vm455_vm0, %v4194_v7 }
  0x77   :  { %624 = vmatpush1.bf16.msra.mxu0 %v3544_v20  ;;  %655 = vmatprep.mubr.bf16.mxu0 %v4091_v0 }
  0x78   :  { %625 = vmatprep.subr.bf16.mxu0 %v3549_v21  ;;  %749 = vmatpush1.bf16.msra.mxu1 %v3579_v35 }
  0x79   :  { %828 = vmatprep.subr.bf16.mxu1 %v3584_v38 }
  0x7b   :  { %626 = vmatpush1.bf16.msra.mxu0 %v3547_v24  ;;  %3123 = vmatmul.mubr.msk.bf16.vlgmr.msra.gmra.mrb[8].mxu1 %vm455_vm0, %v4194_v7 }
  0x7c   :  { %705 = vmatprep.subr.bf16.mxu0 %v3552_v25  ;;  %829 = vmatpush1.bf16.msra.mxu1 %v3582_v39 }
  0x7d   :  { %860 = vmatprep.mubr.bf16.mxu1 %v4091_v0  ;;  %830 = vmatprep.subr.bf16.mxu1 %v3587_v44 }
  0x7e   :  { %3120 = vmatmul.mubr.msk.bf16.vlgmr.msra.gmra.mrb[12].mxu0 %vm455_vm0, %v4194_v7 }
  0x7f   :  { %706 = vmatpush1.bf16.msra.mxu0 %v3550_v28  ;;  %737 = vmatprep.mubr.bf16.mxu0 %v4091_v0 }
  0x80   :  { %707 = vmatprep.subr.bf16.mxu0 %v3555_v29  ;;  %831 = vmatpush1.bf16.msra.mxu1 %v3585_v45  ;;  %v189_v29 = vrot.slane %v4258_v10, %v156_v63 }
  0x81   :  { %3439 = vmatprep.subr.bf16.mxu1 %v4092_v42 }
  0x83   :  { %708 = vmatpush1.bf16.msra.mxu0 %v3553_v32  ;;  %3125 = vmatmul.mubr.msk.bf16.vlgmr.msra.gmra.mrb[12].mxu1 %vm455_vm0, %v4194_v7 }
  0x84   :  { %787 = vmatprep.subr.bf16.mxu0 %v3558_v34  ;;  %3455 = vmatprep.mubr.msk.bf16.mxu1 %vm4093_vm1, %v4092_v42 }
  0x85   :  { %3440 = vmatpush3.bf16.msra.mxu1 %v3588_v46 }
  0x86   :  { %3122 = vmatmul.mubr.msk.bf16.vlgmr.msra.gmra.mrb[16].mxu0 %vm455_vm0, %v4194_v7  ;;  %3441 = vmatprep.subr.bf16.mxu1 %v4092_v42 }
  0x87   :  { %788 = vmatpush1.bf16.msra.mxu0 %v3556_v36  ;;  %819 = vmatprep.mubr.bf16.mxu0 %v4091_v0 }
  0x88   :  { %789 = vmatprep.subr.bf16.mxu0 %v3561_v37  ;;  %v4273_v37 = vld [vmem:[#allocation10 + $0x10] sm:$0x1f] }
  0x89   :  { %3442 = vmatpush3.bf16.msra.mxu1 %v3589_v47  ;;  %v209_v45 = vrot.slane %v4273_v37, %v4264_v13  ;;  %v221_v58 = vrot.slane %v4273_v37, %v156_v63  ;;  %v4291_v63 = vsub.s32 3, %v4247_v60 }
  0x8a   :  { %3443 = vmatprep.subr.bf16.mxu1 %v4092_v42 }
  0x8b   :  { %790 = vmatpush1.bf16.msra.mxu0 %v3559_v40 }
  0x8c   :  { %3431 = vmatprep.subr.bf16.mxu0 %v4092_v42 }
  0x8d   :  { %3444 = vmatpush3.bf16.msra.mxu1 %v3590_v48 }
  0x8e   :  { %3124 = vmatmul.mubr.msk.bf16.vlgmr.msra.gmra.mrb[20].mxu0 %vm455_vm0, %v4194_v7  ;;  %3445 = vmatprep.subr.bf16.mxu1 %v4092_v42 }
  0x8f   :  { %3432 = vmatpush3.bf16.msra.mxu0 %v3562_v41  ;;  %3435 = vmatprep.mubr.msk.bf16.mxu0 %vm4093_vm1, %v4092_v42 }
  0x90   :  { %3433 = vmatprep.subr.bf16.mxu0 %v4092_v42 }
  0x91   :  { %3446 = vmatpush3.bf16.msra.mxu1 %v3591_v49  ;;  %v145_v49 = vrot.slane %v4254_v3, %v4264_v13 }
  0x92   :  { %3447 = vmatprep.subr.bf16.mxu1 %v4092_v42 }
  0x93   :  { %3434 = vmatpush3.bf16.msra.mxu0 %v3563_v43  ;;  %v205_v43 = vrot.slane %v4273_v37, %v4261_v11 }
  0x94   :  { %3459 = vmatprep.subr.bf16.mxu0 %v4092_v42 }
  0x95   :  { %3448 = vmatpush3.bf16.msra.mxu1 %v3592_v50 }
  0x96   :  { %3436 = vmatmul.mubr.msk.bf16.vlgmr.msra.gmra.mrb[24].mxu0 %vm455_vm0, %v4194_v7  ;;  %3449 = vmatprep.subr.bf16.mxu1 %v4092_v42 }
  0x97   :  { %3475 = vmatprep.mubr.msk.bf16.mxu0 %vm4093_vm1, %v4092_v42 }
  0x99   :  { %3450 = vmatpush3.bf16.msra.mxu1 %v3593_v51 }
  0x9a   :  { %3451 = vmatprep.subr.bf16.mxu1 %v4092_v42 }
  0x9d   :  { %3452 = vmatpush3.bf16.msra.mxu1 %v3594_v52 }
  0x9e   :  { %3453 = vmatprep.subr.bf16.mxu1 %v4092_v42 }
  0xa1   :  { %3454 = vmatpush3.bf16.msra.mxu1 %v3595_v53 }
  0xa2   :  { %1572 = vmatprep.subr.bf16.mxu1 %v3598_v54 }
 0x139   :  { %v4243_v55 = vpop.f32.mrb[0].mxu0 }
 0x13a   :  { %v4245_v56 = vpop.f32.mrb[1].mxu0 }
 0x13b   :  { %v497_v57 = vpop.f32.mrb[2].mxu0 }
 0x13c   :  { %v498_v59 = vpop.f32.mrb[3].mxu0 }
 0x13d   :  { %v496_v59 = vadd.f32 %v4245_v56, %v145_v49  ;;  %v164_v56 = vsub.s32 6, %v4247_v60 }
 0x13f   :  { %v910_v6 = vmax.f32 %v496_v59, 0.0 }
 0x141   :  { %v4249_v61 = vpop.f32.mrb[4].mxu0 }
 0x142   :  { %v4251_v62 = vpop.f32.mrb[5].mxu0 }
 0x143   :  { %v538_v1 = vpop.f32.mrb[6].mxu0 }
 0x144   :  { %v539_v2 = vpop.f32.mrb[7].mxu0 }
 0x149   :  { %v575_v5 = vpop.f32.mrb[8].mxu0 }
 0x14a   :  { %v576_v7 = vadd.f32 %v575_v5, %v157_v4  ;;  %v577_v8 = vpop.f32.mrb[9].mxu0 }
 0x14b   :  { %v579_v9 = vpop.f32.mrb[10].mxu0  ;;  %v578_v17 = vadd.f32 %v577_v8, %v161_v14 }
 0x14c   :  { %v580_v12 = vpop.f32.mrb[11].mxu0  ;;  %v913_v23 = vmax.f32 %v576_v7, 0.0 }
 0x14d   :  { %v914_v26 = vmax.f32 %v578_v17, 0.0  ;;  %v3596_v12 = vld [vmem:[#allocation7] ss:$16 sps:$4 sm:$0xff]   ;;  %v4288_v17 = vsub.s32 2, %v4247_v60 }
 0x151   :  { %v657_v18 = vpop.f32.mrb[12].mxu0 }
 0x152   :  { %v658_v19 = vadd.f32 %v657_v18, %v173_v15  ;;  %v659_v20 = vpop.f32.mrb[13].mxu0  ;;  %v3601_v15 = vld [vmem:[#allocation7 + $0x24] ss:$16 sps:$4 sm:$0xff]   ;;  %v616_v18 = vpop.f32.mrb[0].mxu1 }
 0x153   :  { %v660_v21 = vadd.f32 %v659_v20, %v177_v16  ;;  %v661_v22 = vpop.f32.mrb[14].mxu0  ;;  %v1237_v16 = vpack.c.bf16 %v910_v6, %v910_v6  ;;  %v3692_v20 = vld [vmem:[#allocation8 + $0x24] ss:$40 sps:$4 sm:$0xff]  }
 0x154   :  { %v917_v24 = vmax.f32 %v658_v19, 0.0  ;;  %v662_v25 = vpop.f32.mrb[15].mxu0  ;;  %v168_v19 = vsub.s32 7, %v4247_v60  ;;  %v618_v22 = vpop.f32.mrb[1].mxu1  ;;  %3460 = vmatpush3.bf16.msra.mxu0 %v3692_v20  ;;  %v3693_v60 = vld [vmem:[#allocation8 + $0x74] ss:$40 sps:$4 sm:$0xff]  }
 0x155   :  { %v918_v27 = vmax.f32 %v660_v21, 0.0  ;;  %v3599_v21 = vld [vmem:[#allocation7 + $0x20] ss:$16 sps:$4 sm:$0xff]   ;;  %v165_v25 = vrot.slane %v4254_v3, %v164_v56  ;;  %3461 = vmatprep.subr.bf16.mxu0 %v4092_v42  ;;  %v3698_v20 = vld [vmem:[#allocation8 + $0x204] ss:$40 sps:$4 sm:$0xff]  }
 0x156   :  { %v930_v28 = vadd.f32 %v917_v24, %v913_v23  ;;  %v181_v23 = vrot.slane %v4258_v10, %v4288_v17  ;;  %v3604_v24 = vld [vmem:[#allocation7 + $0x44] ss:$16 sps:$4 sm:$0xff]  }
 0x157   :  { %v931_v30 = vadd.f32 %v918_v27, %v914_v26  ;;  %v169_v26 = vrot.slane %v4254_v3, %v168_v19  ;;  %v620_v27 = vpop.f32.mrb[2].mxu1 }
 0x158   :  { %3462 = vmatpush3.bf16.msra.mxu0 %v3693_v60  ;;  %v3623_v60 = vld [vmem:[#allocation7 + $0x120] ss:$16 sps:$4 sm:$0xff]  }
 0x159   :  { %v739_v32 = vpop.f32.mrb[16].mxu0  ;;  %3463 = vmatprep.subr.bf16.mxu0 %v4092_v42 }
 0x15a   :  { %v740_v33 = vadd.f32 %v739_v32, %v189_v29  ;;  %v741_v34 = vpop.f32.mrb[17].mxu0  ;;  %v621_v29 = vpop.f32.mrb[3].mxu1 }
 0x15b   :  { %v742_v35 = vadd.f32 %v741_v34, %v193_v31  ;;  %v743_v36 = vpop.f32.mrb[18].mxu0  ;;  %v619_v31 = vadd.f32 %v618_v22, %v169_v26  ;;  %v698_v32 = vpop.f32.mrb[4].mxu1  ;;  %v3622_v22 = vld [vmem:[#allocation7 + $0x104] ss:$16 sps:$4 sm:$0xff]  }
 0x15c   :  { %v921_v38 = vmax.f32 %v740_v33, 0.0  ;;  %v744_v39 = vpop.f32.mrb[19].mxu0  ;;  %v3602_v33 = vld [vmem:[#allocation7 + $0x40] ss:$16 sps:$4 sm:$0xff]   ;;  %v699_v34 = vadd.f32 %v698_v32, %v181_v23  ;;  %v197_v36 = vrot.slane %v4258_v10, %v164_v56  ;;  %v3697_v56 = vld [vmem:[#allocation8 + $0x1b4] ss:$40 sps:$4 sm:$0xff]   ;;  %v213_v23 = vrot.slane %v4273_v37, %v4288_v17 }
 0x15d   :  { %v922_v40 = vmax.f32 %v742_v35, 0.0  ;;  %v700_v35 = vpop.f32.mrb[5].mxu1  ;;  %v3625_v26 = vld [vmem:[#allocation7 + $0x124] ss:$16 sps:$4 sm:$0xff]  }
 0x15e   :  { %v934_v41 = vadd.f32 %v930_v28, %v921_v38  ;;  %v185_v28 = vrot.slane %v4258_v10, %v4291_v63  ;;  %v3607_v38 = vld [vmem:[#allocation7 + $0x64] ss:$16 sps:$4 sm:$0xff]  }
 0x15f   :  { %v935_v44 = vadd.f32 %v931_v30, %v922_v40  ;;  %v617_v30 = vadd.f32 %v616_v18, %v165_v25  ;;  %v916_v40 = vmax.f32 %v619_v31, 0.0  ;;  %v3614_v18 = vld [vmem:[#allocation7 + $0xc0] ss:$16 sps:$4 sm:$0xff]   ;;  %v217_v25 = vrot.slane %v4273_v37, %v4291_v63  ;;  %v3628_v32 = vld [vmem:[#allocation7 + $0x144] ss:$16 sps:$4 sm:$0xff]  }
 0x160   :  { %v3631_v37 = vld [vmem:[#allocation7 + $0x164] ss:$16 sps:$4 sm:$0xff]  }
 0x161   :  { %v821_v46 = vpop.f32.mrb[20].mxu0  ;;  %v915_v39 = vmax.f32 %v617_v30, 0.0 }
 0x162   :  { %v822_v47 = vadd.f32 %v821_v46, %v205_v43  ;;  %v823_v48 = vpop.f32.mrb[21].mxu0  ;;  %v702_v43 = vpop.f32.mrb[6].mxu1 }
 0x163   :  { %v824_v50 = vadd.f32 %v823_v48, %v209_v45  ;;  %v825_v51 = vpop.f32.mrb[22].mxu0  ;;  %v919_v45 = vmax.f32 %v699_v34, 0.0  ;;  %v703_v46 = vpop.f32.mrb[7].mxu1  ;;  %v3632_v43 = vld [vmem:[#allocation7 + $0x180] ss:$16 sps:$4 sm:$0xff]  }
 0x164   :  { %v925_v52 = vmax.f32 %v822_v47, 0.0  ;;  %v826_v53 = vpop.f32.mrb[23].mxu0  ;;  %v3694_v47 = vld [vmem:[#allocation8 + $0xc4] ss:$40 sps:$4 sm:$0xff]   ;;  %v780_v49 = vpop.f32.mrb[8].mxu1  ;;  %v141_v46 = vrot.slane %v4254_v3, %v4261_v11 }
 0x165   :  { %v926_v54 = vmax.f32 %v824_v50, 0.0  ;;  %v3605_v50 = vld [vmem:[#allocation7 + $0x60] ss:$16 sps:$4 sm:$0xff]   ;;  %v932_v51 = vadd.f32 %v919_v45, %v915_v39  ;;  %v782_v53 = vpop.f32.mrb[9].mxu1  ;;  %3464 = vmatpush3.bf16.msra.mxu0 %v3694_v47  ;;  %v3640_v47 = vld [vmem:[#allocation7 + $0x1c4] ss:$16 sps:$4 sm:$0xff]  }
 0x166   :  { %v4281_v57 = vadd.f32 %v934_v41, %v925_v52  ;;  %v701_v41 = vadd.f32 %v700_v35, %v185_v28  ;;  %v781_v52 = vadd.f32 %v780_v49, %v197_v36  ;;  %3465 = vmatprep.subr.bf16.mxu0 %v4092_v42  ;;  %v3635_v45 = vld [vmem:[#allocation7 + $0x1a0] ss:$16 sps:$4 sm:$0xff]  }
 0x167   :  { %v4285_v1 = vadd.f32 %v935_v44, %v926_v54  ;;  %v201_v44 = vrot.slane %v4258_v10, %v168_v19  ;;  %v3610_v54 = vld [vmem:[#allocation7 + $0x84] ss:$16 sps:$4 sm:$0xff]   ;;  %v3638_v49 = vld [vmem:[#allocation7 + $0x1c0] ss:$16 sps:$4 sm:$0xff]  }
 0x168   :  { %v920_v48 = vmax.f32 %v701_v41, 0.0  ;;  %v3619_v19 = vld [vmem:[#allocation7 + $0xe4] ss:$16 sps:$4 sm:$0xff]  }
 0x169   :  { %v903_v2 = vpop.f32.mrb[24].mxu0  ;;  %v783_v59 = vadd.f32 %v782_v53, %v201_v44  ;;  %v3634_v41 = vld [vmem:[#allocation7 + $0x184] ss:$16 sps:$4 sm:$0xff]   ;;  %v3641_v53 = vld [vmem:[#allocation7 + $0x1e0] ss:$16 sps:$4 sm:$0xff]  }
 0x16a   :  { %v904_v4 = vadd.f32 %v903_v2, %v221_v58  ;;  %v3437_v5 = vpop.f32.mrb[25].mxu0  ;;  %v933_v58 = vadd.f32 %v920_v48, %v916_v40  ;;  %v784_v2 = vpop.f32.mrb[10].mxu1  ;;  %v3629_v40 = vld [vmem:[#allocation7 + $0x160] ss:$16 sps:$4 sm:$0xff]   ;;  %v3637_v44 = vld [vmem:[#allocation7 + $0x1a4] ss:$16 sps:$4 sm:$0xff]   ;;  %v153_v48 = vrot.slane %v4254_v3, %v4291_v63 }
 0x16b   :  { %v906_v7 = vpop.f32.mrb[26].mxu0  ;;  %v785_v10 = vpop.f32.mrb[11].mxu1  ;;  %v3695_v5 = vld [vmem:[#allocation8 + $0x114] ss:$40 sps:$4 sm:$0xff]   ;;  %v924_v6 = vmax.f32 %v783_v59, 0.0 }
 0x16c   :  { %v929_v8 = vmax.f32 %v904_v4, 0.0  ;;  %v3438_v9 = vpop.f32.mrb[27].mxu0  ;;  %v923_v4 = vmax.f32 %v781_v52, 0.0  ;;  %v3608_v7 = vld [vmem:[#allocation7 + $0x80] ss:$16 sps:$4 sm:$0xff]   ;;  %3466 = vmatpush3.bf16.msra.mxu0 %v3695_v5  ;;  %v862_v27 = vpop.f32.mrb[12].mxu1  ;;  %v537_v52 = vadd.f32 %v4251_v62, %v153_v48 }
 0x16d   :  { %v3613_v9 = vld [vmem:[#allocation7 + $0xa4] ss:$16 sps:$4 sm:$0xff]   ;;  %3467 = vmatprep.subr.bf16.mxu0 %v4092_v42  ;;  %v863_v28 = vadd.f32 %v862_v27, %v213_v23  ;;  %v864_v29 = vpop.f32.mrb[13].mxu1  ;;  %v3644_v2 = vld [vmem:[#allocation7 + $0x200] ss:$16 sps:$4 sm:$0xff]  }
 0x16e   :  { %v962_v14 = vpack.c.bf16 %v929_v8, %v929_v8  ;;  %v936_v8 = vadd.f32 %v932_v51, %v923_v4  ;;  %v865_v30 = vadd.f32 %v864_v29, %v217_v25  ;;  %v866_v31 = vpop.f32.mrb[14].mxu1  ;;  %v3643_v51 = vld [vmem:[#allocation7 + $0x1e4] ss:$16 sps:$4 sm:$0xff]   ;;  %v912_v59 = vmax.f32 %v537_v52, 0.0  ;;  %v3650_v62 = vld [vmem:[#allocation7 + $0x240] ss:$16 sps:$4 sm:$0xff]  }
 0x16f   :  { %v867_v34 = vpop.f32.mrb[15].mxu1  ;;  %v3649_v10 = vld [vmem:[#allocation7 + $0x224] ss:$16 sps:$4 sm:$0xff]   ;;  %v3683_v31 = vld [vmem:[#allocation7 + $0x3a0] ss:$16 sps:$4 sm:$0xff]  }
 0x170   :  { %3456 = vmatmul.mubr.bf16.vlgmr.msra.gmra.mrb[16].mxu1 %v962_v14  ;;  %v3696_v14 = vld [vmem:[#allocation8 + $0x164] ss:$40 sps:$4 sm:$0xff]   ;;  %v928_v35 = vmax.f32 %v865_v30, 0.0  ;;  %v1239_v63 = vpack.c.bf16 %v912_v59, %v912_v59  ;;  %v3686_v34 = vld [vmem:[#allocation7 + $0x3c0] ss:$16 sps:$4 sm:$0xff]  }
 0x171   :  { %1573 = vmatpush1.bf16.msra.mxu1 %v3596_v12  ;;  %1604 = vmatprep.mubr.bf16.mxu1 %v1237_v16  ;;  %v937_v12 = vadd.f32 %v933_v58, %v924_v6  ;;  %v3616_v16 = vld [vmem:[#allocation7 + $0xc4] ss:$16 sps:$4 sm:$0xff]   ;;  %v3703_v52 = vld [vmem:[#allocation7 + $0x28] ss:$16 sps:$4 sm:$0xff]  }
 0x172   :  { %1574 = vmatprep.subr.bf16.mxu1 %v3601_v15  ;;  %v3611_v15 = vld [vmem:[#allocation7 + $0xa0] ss:$16 sps:$4 sm:$0xff]   ;;  %3468 = vmatpush3.bf16.msra.mxu0 %v3696_v14  ;;  %v3646_v58 = vld [vmem:[#allocation7 + $0x204] ss:$16 sps:$4 sm:$0xff]   ;;  %v3709_v59 = vld [vmem:[#allocation7 + $0x68] ss:$16 sps:$4 sm:$0xff]  }
 0x173   :  { %3469 = vmatprep.subr.bf16.mxu0 %v4092_v42  ;;  %v4316_v39 = vadd.f32 %v937_v12, %v928_v35  ;;  %v3652_v5 = vld [vmem:[#allocation7 + $0x244] ss:$16 sps:$4 sm:$0xff]   ;;  %v3659_v14 = vld [vmem:[#allocation7 + $0x2a0] ss:$16 sps:$4 sm:$0xff]  }
 0x174   :  { %v3655_v6 = vld [vmem:[#allocation7 + $0x264] ss:$16 sps:$4 sm:$0xff]  }
 0x175   :  { %1575 = vmatpush1.bf16.msra.mxu1 %v3599_v21  ;;  %v3617_v21 = vld [vmem:[#allocation7 + $0xe0] ss:$16 sps:$4 sm:$0xff]   ;;  %v3661_v12 = vld [vmem:[#allocation7 + $0x2a4] ss:$16 sps:$4 sm:$0xff]  }
 0x176   :  { %1576 = vmatprep.subr.bf16.mxu1 %v3604_v24  ;;  %3470 = vmatpush3.bf16.msra.mxu0 %v3697_v56  ;;  %v3620_v24 = vld [vmem:[#allocation7 + $0x100] ss:$16 sps:$4 sm:$0xff]   ;;  %v3699_v56 = vld [vmem:[#allocation8 + $0x254] ss:$40 sps:$4 sm:$0xff]  }
 0x177   :  { %3471 = vmatprep.subr.bf16.mxu0 %v4092_v42  ;;  %v3673_v23 = vld [vmem:[#allocation7 + $0x324] ss:$16 sps:$4 sm:$0xff]  }
 0x178   :  { %v3676_v25 = vld [vmem:[#allocation7 + $0x344] ss:$16 sps:$4 sm:$0xff]  }
 0x179   :  { %1577 = vmatpush1.bf16.msra.mxu1 %v3602_v33  ;;  %v927_v33 = vmax.f32 %v863_v28, 0.0  ;;  %v3679_v27 = vld [vmem:[#allocation7 + $0x364] ss:$16 sps:$4 sm:$0xff]   ;;  %v3677_v28 = vld [vmem:[#allocation7 + $0x360] ss:$16 sps:$4 sm:$0xff]  }
 0x17a   :  { %1578 = vmatprep.subr.bf16.mxu1 %v3607_v38  ;;  %3472 = vmatpush3.bf16.msra.mxu0 %v3698_v20  ;;  %v3626_v38 = vld [vmem:[#allocation7 + $0x140] ss:$16 sps:$4 sm:$0xff]   ;;  %v3682_v29 = vld [vmem:[#allocation7 + $0x384] ss:$16 sps:$4 sm:$0xff]  }
 0x17b   :  { %3473 = vmatprep.subr.bf16.mxu0 %v4092_v42  ;;  %v4314_v36 = vadd.f32 %v936_v8, %v927_v33  ;;  %v3658_v8 = vld [vmem:[#allocation7 + $0x284] ss:$16 sps:$4 sm:$0xff]   ;;  %v3665_v20 = vld [vmem:[#allocation7 + $0x2e0] ss:$16 sps:$4 sm:$0xff]  }
 0x17c   :  { %v3685_v30 = vld [vmem:[#allocation7 + $0x3a4] ss:$16 sps:$4 sm:$0xff]  }
 0x17d   :  { %1579 = vmatpush1.bf16.msra.mxu1 %v3605_v50  ;;  %v494_v50 = vadd.f32 %v4243_v55, %v141_v46  ;;  %v3647_v55 = vld [vmem:[#allocation7 + $0x220] ss:$16 sps:$4 sm:$0xff]   ;;  %v3688_v33 = vld [vmem:[#allocation7 + $0x3c4] ss:$16 sps:$4 sm:$0xff]  }
 0x17e   :  { %1580 = vmatprep.subr.bf16.mxu1 %v3610_v54  ;;  %3474 = vmatpush3.bf16.msra.mxu0 %v3699_v56  ;;  %v3738_v56 = vld [vmem:[#allocation7 + $0x18c] ss:$16 sps:$4 sm:$0xff]  }
 0x17f   :  { %v909_v54 = vmax.f32 %v494_v50, 0.0  ;;  %v3705_v50 = vld [vmem:[#allocation7 + $0x2c] ss:$16 sps:$4 sm:$0xff]  }
 0x181   :  { %1581 = vmatpush1.bf16.msra.mxu1 %v3608_v7  ;;  %v1236_v4 = vpack.c.bf16 %v909_v54, %v909_v54  ;;  %v3653_v7 = vld [vmem:[#allocation7 + $0x260] ss:$16 sps:$4 sm:$0xff]   ;;  %v3706_v54 = vld [vmem:[#allocation7 + $0x48] ss:$16 sps:$4 sm:$0xff]  }
 0x182   :  { %1582 = vmatprep.subr.bf16.mxu1 %v3613_v9  ;;  %v3656_v9 = vld [vmem:[#allocation7 + $0x280] ss:$16 sps:$4 sm:$0xff]  }
 0x185   :  { %1583 = vmatpush1.bf16.msra.mxu1 %v3611_v15  ;;  %v3664_v15 = vld [vmem:[#allocation7 + $0x2c4] ss:$16 sps:$4 sm:$0xff]  }
 0x186   :  { %1584 = vmatprep.subr.bf16.mxu1 %v3616_v16  ;;  %v3662_v16 = vld [vmem:[#allocation7 + $0x2c0] ss:$16 sps:$4 sm:$0xff]  }
 0x189   :  { %1585 = vmatpush1.bf16.msra.mxu1 %v3614_v18  ;;  %v3667_v18 = vld [vmem:[#allocation7 + $0x2e4] ss:$16 sps:$4 sm:$0xff]  }
 0x18a   :  { %1586 = vmatprep.subr.bf16.mxu1 %v3619_v19  ;;  %v3702_v19 = vld [vmem:[#allocation7 + $0xc] ss:$16 sps:$4 sm:$0xff]  }
 0x18b   :  { %2056 = vmatprep.subr.bf16.mxu0 %v3702_v19  ;;  %v3741_v19 = vld [vmem:[#allocation7 + $0x1ac] ss:$16 sps:$4 sm:$0xff]  }
 0x18d   :  { %1587 = vmatpush1.bf16.msra.mxu1 %v3617_v21  ;;  %v3670_v21 = vld [vmem:[#allocation7 + $0x304] ss:$16 sps:$4 sm:$0xff]  }
 0x18e   :  { %1588 = vmatprep.subr.bf16.mxu1 %v3622_v22  ;;  %v3668_v22 = vld [vmem:[#allocation7 + $0x300] ss:$16 sps:$4 sm:$0xff]  }
 0x191   :  { %1589 = vmatpush1.bf16.msra.mxu1 %v3620_v24  ;;  %v3671_v24 = vld [vmem:[#allocation7 + $0x320] ss:$16 sps:$4 sm:$0xff]  }
 0x192   :  { %1590 = vmatprep.subr.bf16.mxu1 %v3625_v26  ;;  %v3674_v26 = vld [vmem:[#allocation7 + $0x340] ss:$16 sps:$4 sm:$0xff]  }
 0x195   :  { %1591 = vmatpush1.bf16.msra.mxu1 %v3623_v60  ;;  %v3680_v60 = vld [vmem:[#allocation7 + $0x380] ss:$16 sps:$4 sm:$0xff]  }
 0x196   :  { %1592 = vmatprep.subr.bf16.mxu1 %v3628_v32  ;;  %v149_v32 = vrot.slane %v4254_v3, %v4288_v17  ;;  %v943_v3 = vmul.f32 0.25, %v4285_v1  ;;  %v3714_v1 = vld [vmem:[#allocation7 + $0x8c] ss:$16 sps:$4 sm:$0xff]  }
 0x198   :  { %v535_v35 = vadd.f32 %v4249_v61, %v149_v32  ;;  %v3756_v32 = vld [vmem:[#allocation7 + $0x24c] ss:$16 sps:$4 sm:$0xff]  }
 0x199   :  { %1593 = vmatpush1.bf16.msra.mxu1 %v3626_v38  ;;  %v3691_v38 = vld [vmem:[#allocation7 + $0x3e4] ss:$16 sps:$4 sm:$0xff]  }
 0x19a   :  { %1594 = vmatprep.subr.bf16.mxu1 %v3631_v37  ;;  %v3689_v37 = vld [vmem:[#allocation7 + $0x3e0] ss:$16 sps:$4 sm:$0xff]  }
 0x19d   :  { %1595 = vmatpush1.bf16.msra.mxu1 %v3629_v40  ;;  %v911_v40 = vmax.f32 %v535_v35, 0.0  ;;  %v3760_v35 = vld [vmem:[#allocation7 + $0x288] ss:$16 sps:$4 sm:$0xff]  }
 0x19e   :  { %1596 = vmatprep.subr.bf16.mxu1 %v3634_v41 }
 0x19f   :  { %v1238_v41 = vpack.c.bf16 %v911_v40, %v911_v40  ;;  %v3768_v40 = vld [vmem:[#allocation7 + $0x2cc] ss:$16 sps:$4 sm:$0xff]  }
 0x1a1   :  { %1597 = vmatpush1.bf16.msra.mxu1 %v3632_v43  ;;  %v3127_v43 = vld [vmem:[#allocation10 + $0x15] ss:$0 sm:$0xff] }
 0x1a2   :  { %1598 = vmatprep.subr.bf16.mxu1 %v3637_v44 }
 0x1a5   :  { %1599 = vmatpush1.bf16.msra.mxu1 %v3635_v45 }
 0x1a6   :  { %1600 = vmatprep.subr.bf16.mxu1 %v3640_v47 }
 0x1a9   :  { %1601 = vmatpush1.bf16.msra.mxu1 %v3638_v49  ;;  %v3700_v49 = vld [vmem:[#allocation7 + $0x8] ss:$16 sps:$4 sm:$0xff]  }
 0x1aa   :  { %1602 = vmatprep.subr.bf16.mxu1 %v3643_v51  ;;  %v1721_v51 = vpack.c.bf16 %v943_v3, %v943_v3  ;;  %v3849_v3 = vld [vmem:[#allocation8 + $0x5c] ss:$40 sps:$4 sm:$0xff]  }
 0x1ad   :  { %1603 = vmatpush1.bf16.msra.mxu1 %v3641_v53  ;;  %v3708_v53 = vld [vmem:[#allocation7 + $0x4c] ss:$16 sps:$4 sm:$0xff]  }
 0x1ae   :  { %1613 = vmatprep.subr.bf16.mxu1 %v3646_v58  ;;  %v3711_v58 = vld [vmem:[#allocation7 + $0x6c] ss:$16 sps:$4 sm:$0xff]  }
 0x1b0   :  { %1605 = vmatmul.mubr.bf16.vlgmr.msra.gmra.mrb[20].mxu1 %v1236_v4  ;;  %v3717_v4 = vld [vmem:[#allocation7 + $0xac] ss:$16 sps:$4 sm:$0xff]  }
 0x1b1   :  { %1614 = vmatpush1.bf16.msra.mxu1 %v3644_v2  ;;  %1645 = vmatprep.mubr.bf16.mxu1 %v1239_v63  ;;  %v3712_v2 = vld [vmem:[#allocation7 + $0x88] ss:$16 sps:$4 sm:$0xff]   ;;  %v3720_v63 = vld [vmem:[#allocation7 + $0xcc] ss:$16 sps:$4 sm:$0xff]  }
 0x1b2   :  { %1615 = vmatprep.subr.bf16.mxu1 %v3649_v10  ;;  %v3715_v10 = vld [vmem:[#allocation7 + $0xa8] ss:$16 sps:$4 sm:$0xff]  }
 0x1b5   :  { %1616 = vmatpush1.bf16.msra.mxu1 %v3647_v55  ;;  %v3718_v55 = vld [vmem:[#allocation7 + $0xc8] ss:$16 sps:$4 sm:$0xff]  }
 0x1b6   :  { %1617 = vmatprep.subr.bf16.mxu1 %v3652_v5  ;;  %v3723_v5 = vld [vmem:[#allocation7 + $0xec] ss:$16 sps:$4 sm:$0xff]  }
 0x1b9   :  { %1618 = vmatpush1.bf16.msra.mxu1 %v3650_v62  ;;  %v3721_v62 = vld [vmem:[#allocation7 + $0xe8] ss:$16 sps:$4 sm:$0xff]  }
 0x1ba   :  { %1619 = vmatprep.subr.bf16.mxu1 %v3655_v6  ;;  %v3726_v6 = vld [vmem:[#allocation7 + $0x10c] ss:$16 sps:$4 sm:$0xff]  }
 0x1bd   :  { %1620 = vmatpush1.bf16.msra.mxu1 %v3653_v7  ;;  %v3724_v7 = vld [vmem:[#allocation7 + $0x108] ss:$16 sps:$4 sm:$0xff]  }
 0x1be   :  { %1621 = vmatprep.subr.bf16.mxu1 %v3658_v8  ;;  %v3729_v8 = vld [vmem:[#allocation7 + $0x12c] ss:$16 sps:$4 sm:$0xff]  }
 0x1c1   :  { %1622 = vmatpush1.bf16.msra.mxu1 %v3656_v9  ;;  %v3727_v9 = vld [vmem:[#allocation7 + $0x128] ss:$16 sps:$4 sm:$0xff]  }
 0x1c2   :  { %1623 = vmatprep.subr.bf16.mxu1 %v3661_v12  ;;  %v3732_v12 = vld [vmem:[#allocation7 + $0x14c] ss:$16 sps:$4 sm:$0xff]  }
 0x1c5   :  { %1624 = vmatpush1.bf16.msra.mxu1 %v3659_v14  ;;  %v3730_v14 = vld [vmem:[#allocation7 + $0x148] ss:$16 sps:$4 sm:$0xff]  }
 0x1c6   :  { %1625 = vmatprep.subr.bf16.mxu1 %v3664_v15  ;;  %v3735_v15 = vld [vmem:[#allocation7 + $0x16c] ss:$16 sps:$4 sm:$0xff]  }
 0x1c9   :  { %1626 = vmatpush1.bf16.msra.mxu1 %v3662_v16  ;;  %v3733_v16 = vld [vmem:[#allocation7 + $0x168] ss:$16 sps:$4 sm:$0xff]  }
 0x1ca   :  { %1627 = vmatprep.subr.bf16.mxu1 %v3667_v18  ;;  %v3736_v18 = vld [vmem:[#allocation7 + $0x188] ss:$16 sps:$4 sm:$0xff]  }
 0x1cd   :  { %1628 = vmatpush1.bf16.msra.mxu1 %v3665_v20  ;;  %v3739_v20 = vld [vmem:[#allocation7 + $0x1a8] ss:$16 sps:$4 sm:$0xff]  }
 0x1ce   :  { %1629 = vmatprep.subr.bf16.mxu1 %v3670_v21  ;;  %v3744_v21 = vld [vmem:[#allocation7 + $0x1cc] ss:$16 sps:$4 sm:$0xff]  }
 0x1d1   :  { %1630 = vmatpush1.bf16.msra.mxu1 %v3668_v22  ;;  %v3742_v22 = vld [vmem:[#allocation7 + $0x1c8] ss:$16 sps:$4 sm:$0xff]  }
 0x1d2   :  { %1631 = vmatprep.subr.bf16.mxu1 %v3673_v23  ;;  %v3747_v23 = vld [vmem:[#allocation7 + $0x1ec] ss:$16 sps:$4 sm:$0xff]  }
 0x1d5   :  { %1632 = vmatpush1.bf16.msra.mxu1 %v3671_v24  ;;  %v3745_v24 = vld [vmem:[#allocation7 + $0x1e8] ss:$16 sps:$4 sm:$0xff]  }
 0x1d6   :  { %1633 = vmatprep.subr.bf16.mxu1 %v3676_v25  ;;  %v942_v25 = vmul.f32 0.25, %v4281_v57  ;;  %v3759_v57 = vld [vmem:[#allocation7 + $0x26c] ss:$16 sps:$4 sm:$0xff]  }
 0x1d9   :  { %1634 = vmatpush1.bf16.msra.mxu1 %v3674_v26  ;;  %v3750_v26 = vld [vmem:[#allocation7 + $0x20c] ss:$16 sps:$4 sm:$0xff]  }
 0x1da   :  { %1635 = vmatprep.subr.bf16.mxu1 %v3679_v27  ;;  %v945_v27 = vmul.f32 0.25, %v4316_v39  ;;  %v3762_v39 = vld [vmem:[#allocation7 + $0x28c] ss:$16 sps:$4 sm:$0xff]  }
 0x1dd   :  { %1636 = vmatpush1.bf16.msra.mxu1 %v3677_v28  ;;  %v3748_v28 = vld [vmem:[#allocation7 + $0x208] ss:$16 sps:$4 sm:$0xff]  }
 0x1de   :  { %1637 = vmatprep.subr.bf16.mxu1 %v3682_v29  ;;  %v1720_v29 = vpack.c.bf16 %v942_v25, %v942_v25 }
 0x1e1   :  { %1638 = vmatpush1.bf16.msra.mxu1 %v3680_v60  ;;  %v3753_v60 = vld [vmem:[#allocation7 + $0x22c] ss:$16 sps:$4 sm:$0xff]  }
 0x1e2   :  { %1639 = vmatprep.subr.bf16.mxu1 %v3685_v30  ;;  %v1723_v30 = vpack.c.bf16 %v945_v27, %v945_v27 }
 0x1e5   :  { %1640 = vmatpush1.bf16.msra.mxu1 %v3683_v31  ;;  %v3751_v31 = vld [vmem:[#allocation7 + $0x228] ss:$16 sps:$4 sm:$0xff]  }
 0x1e6   :  { %1641 = vmatprep.subr.bf16.mxu1 %v3688_v33  ;;  %v3754_v33 = vld [vmem:[#allocation7 + $0x248] ss:$16 sps:$4 sm:$0xff]  }
 0x1e9   :  { %1642 = vmatpush1.bf16.msra.mxu1 %v3686_v34  ;;  %v3757_v34 = vld [vmem:[#allocation7 + $0x268] ss:$16 sps:$4 sm:$0xff]  }
 0x1ea   :  { %1643 = vmatprep.subr.bf16.mxu1 %v3691_v38  ;;  %v3765_v38 = vld [vmem:[#allocation7 + $0x2ac] ss:$16 sps:$4 sm:$0xff]  }
 0x1ed   :  { %1644 = vmatpush1.bf16.msra.mxu1 %v3689_v37  ;;  %v3763_v37 = vld [vmem:[#allocation7 + $0x2a8] ss:$16 sps:$4 sm:$0xff]  }
 0x1f0   :  { %1646 = vmatmul.mubr.bf16.vlgmr.msra.gmra.mrb[20].mxu1 %v1238_v41  ;;  %v3766_v41 = vld [vmem:[#allocation7 + $0x2c8] ss:$16 sps:$4 sm:$0xff]  }
 0x243   :  { %v1052_v44 = vpop.f32.mrb[16].mxu1 }
 0x244   :  { %v1053_v45 = vadd.f32 %v3127_v43, %v1052_v44  ;;  %v3457_v46 = vpop.f32.mrb[17].mxu1  ;;  %v3771_v43 = vld [vmem:[#allocation7 + $0x2ec] ss:$16 sps:$4 sm:$0xff]   ;;  %v3844_v44 = vld [vmem:[#allocation8 + $0x8] ss:$40 sps:$4 sm:$0xff]  }
 0x245   :  { %v1055_v17 = vpop.f32.mrb[18].mxu1  ;;  %v3769_v46 = vld [vmem:[#allocation7 + $0x2e8] ss:$16 sps:$4 sm:$0xff]  }
 0x246   :  { %v1058_v47 = vmax.f32 %v1053_v45, 0.0  ;;  %v3458_v48 = vpop.f32.mrb[19].mxu1  ;;  %v3846_v45 = vld [vmem:[#allocation8 + $0xc] ss:$40 sps:$4 sm:$0xff]  }
 0x247   :  { %v3774_v17 = vld [vmem:[#allocation7 + $0x30c] ss:$16 sps:$4 sm:$0xff]   ;;  %2368 = vmatprep.subr.bf16.mxu1 %v3846_v45 }
 0x248   :  { %v1075_v61 = vpack.c.bf16 %v1058_v47, %v1058_v47  ;;  %2369 = vmatpush1.bf16.msra.mxu1 %v3844_v44  ;;  %v3847_v47 = vld [vmem:[#allocation8 + $0x58] ss:$40 sps:$4 sm:$0xff]   ;;  %v3852_v48 = vld [vmem:[#allocation8 + $0xac] ss:$40 sps:$4 sm:$0xff]   ;;  %v3880_v44 = vld [vmem:[#allocation8 + $0x3c8] ss:$40 sps:$4 sm:$0xff]  }
 0x249   :  { %2370 = vmatprep.subr.bf16.mxu1 %v3849_v3  ;;  %v3885_v45 = vld [vmem:[#allocation8 + $0x41c] ss:$40 sps:$4 sm:$0xff]  }
 0x24a   :  { %3476 = vmatmul.mubr.bf16.vlgmr.msra.gmra.mrb[28].mxu0 %v1075_v61  ;;  %v3777_v61 = vld [vmem:[#allocation7 + $0x32c] ss:$16 sps:$4 sm:$0xff]  }
 0x24b   :  { %2057 = vmatpush1.bf16.msra.mxu0 %v3700_v49  ;;  %2088 = vmatprep.mubr.bf16.mxu0 %v1721_v51  ;;  %v3772_v49 = vld [vmem:[#allocation7 + $0x308] ss:$16 sps:$4 sm:$0xff]   ;;  %v3855_v51 = vld [vmem:[#allocation8 + $0xfc] ss:$40 sps:$4 sm:$0xff]  }
 0x24c   :  { %2058 = vmatprep.subr.bf16.mxu0 %v3705_v50  ;;  %2371 = vmatpush1.bf16.msra.mxu1 %v3847_v47  ;;  %v3850_v50 = vld [vmem:[#allocation8 + $0xa8] ss:$40 sps:$4 sm:$0xff]   ;;  %v3810_v3 = vld [vmem:[#allocation8 + $0x144] ss:$40 sps:$4 sm:$0xff]  }
 0x24d   :  { %2372 = vmatprep.subr.bf16.mxu1 %v3852_v48  ;;  %v3808_v47 = vld [vmem:[#allocation8 + $0x140] ss:$40 sps:$4 sm:$0xff]   ;;  %v3813_v48 = vld [vmem:[#allocation8 + $0x194] ss:$40 sps:$4 sm:$0xff]  }
 0x24f   :  { %2059 = vmatpush1.bf16.msra.mxu0 %v3703_v52  ;;  %v3775_v52 = vld [vmem:[#allocation7 + $0x328] ss:$16 sps:$4 sm:$0xff]  }
 0x250   :  { %2060 = vmatprep.subr.bf16.mxu0 %v3708_v53  ;;  %v3780_v53 = vld [vmem:[#allocation7 + $0x34c] ss:$16 sps:$4 sm:$0xff]   ;;  %2373 = vmatpush1.bf16.msra.mxu1 %v3850_v50  ;;  %v3814_v50 = vld [vmem:[#allocation8 + $0x1e0] ss:$40 sps:$4 sm:$0xff]  }
 0x251   :  { %2374 = vmatprep.subr.bf16.mxu1 %v3855_v51  ;;  %v3819_v51 = vld [vmem:[#allocation8 + $0x234] ss:$40 sps:$4 sm:$0xff]  }
 0x253   :  { %2061 = vmatpush1.bf16.msra.mxu0 %v3706_v54  ;;  %v3853_v54 = vld [vmem:[#allocation8 + $0xf8] ss:$40 sps:$4 sm:$0xff]  }
 0x254   :  { %2062 = vmatprep.subr.bf16.mxu0 %v3711_v58  ;;  %v3858_v58 = vld [vmem:[#allocation8 + $0x14c] ss:$40 sps:$4 sm:$0xff]   ;;  %2375 = vmatpush1.bf16.msra.mxu1 %v3853_v54  ;;  %v3820_v54 = vld [vmem:[#allocation8 + $0x280] ss:$40 sps:$4 sm:$0xff]  }
 0x255   :  { %2376 = vmatprep.subr.bf16.mxu1 %v3858_v58  ;;  %v3825_v58 = vld [vmem:[#allocation8 + $0x2d4] ss:$40 sps:$4 sm:$0xff]  }
 0x257   :  { %2063 = vmatpush1.bf16.msra.mxu0 %v3709_v59  ;;  %v3778_v59 = vld [vmem:[#allocation7 + $0x348] ss:$16 sps:$4 sm:$0xff]  }
 0x258   :  { %2064 = vmatprep.subr.bf16.mxu0 %v3714_v1  ;;  %v3783_v1 = vld [vmem:[#allocation7 + $0x36c] ss:$16 sps:$4 sm:$0xff]  }
 0x25b   :  { %2065 = vmatpush1.bf16.msra.mxu0 %v3712_v2  ;;  %v3856_v2 = vld [vmem:[#allocation8 + $0x148] ss:$40 sps:$4 sm:$0xff]  }
 0x25c   :  { %2066 = vmatprep.subr.bf16.mxu0 %v3717_v4  ;;  %v3861_v4 = vld [vmem:[#allocation8 + $0x19c] ss:$40 sps:$4 sm:$0xff]   ;;  %2377 = vmatpush1.bf16.msra.mxu1 %v3856_v2  ;;  %v3826_v2 = vld [vmem:[#allocation8 + $0x320] ss:$40 sps:$4 sm:$0xff]  }
 0x25d   :  { %2378 = vmatprep.subr.bf16.mxu1 %v3861_v4  ;;  %v3831_v4 = vld [vmem:[#allocation8 + $0x374] ss:$40 sps:$4 sm:$0xff]  }
 0x25f   :  { %2067 = vmatpush1.bf16.msra.mxu0 %v3715_v10  ;;  %v3781_v10 = vld [vmem:[#allocation7 + $0x368] ss:$16 sps:$4 sm:$0xff]  }
 0x260   :  { %2068 = vmatprep.subr.bf16.mxu0 %v3720_v63  ;;  %v3786_v63 = vld [vmem:[#allocation7 + $0x38c] ss:$16 sps:$4 sm:$0xff]  }
 0x263   :  { %2069 = vmatpush1.bf16.msra.mxu0 %v3718_v55  ;;  %v3859_v55 = vld [vmem:[#allocation8 + $0x198] ss:$40 sps:$4 sm:$0xff]  }
 0x264   :  { %2070 = vmatprep.subr.bf16.mxu0 %v3723_v5  ;;  %v3864_v5 = vld [vmem:[#allocation8 + $0x1ec] ss:$40 sps:$4 sm:$0xff]   ;;  %2379 = vmatpush1.bf16.msra.mxu1 %v3859_v55  ;;  %v3832_v55 = vld [vmem:[#allocation8 + $0x3c0] ss:$40 sps:$4 sm:$0xff]  }
 0x265   :  { %2380 = vmatprep.subr.bf16.mxu1 %v3864_v5  ;;  %v3837_v5 = vld [vmem:[#allocation8 + $0x414] ss:$40 sps:$4 sm:$0xff]  }
 0x267   :  { %2071 = vmatpush1.bf16.msra.mxu0 %v3721_v62  ;;  %v3784_v62 = vld [vmem:[#allocation7 + $0x388] ss:$16 sps:$4 sm:$0xff]  }
 0x268   :  { %2072 = vmatprep.subr.bf16.mxu0 %v3726_v6  ;;  %v3789_v6 = vld [vmem:[#allocation7 + $0x3ac] ss:$16 sps:$4 sm:$0xff]  }
 0x26b   :  { %2073 = vmatpush1.bf16.msra.mxu0 %v3724_v7  ;;  %v3862_v7 = vld [vmem:[#allocation8 + $0x1e8] ss:$40 sps:$4 sm:$0xff]  }
 0x26c   :  { %2074 = vmatprep.subr.bf16.mxu0 %v3729_v8  ;;  %v3867_v8 = vld [vmem:[#allocation8 + $0x23c] ss:$40 sps:$4 sm:$0xff]   ;;  %2381 = vmatpush1.bf16.msra.mxu1 %v3862_v7 }
 0x26d   :  { %2382 = vmatprep.subr.bf16.mxu1 %v3867_v8  ;;  %v3840_v7 = vld [vmem:[#allocation8 + $0x464] ss:$40 sps:$4 sm:$0xff]   ;;  %v3838_v8 = vld [vmem:[#allocation8 + $0x460] ss:$40 sps:$4 sm:$0xff]  }
 0x26f   :  { %2075 = vmatpush1.bf16.msra.mxu0 %v3727_v9  ;;  %v3787_v9 = vld [vmem:[#allocation7 + $0x3a8] ss:$16 sps:$4 sm:$0xff]  }
 0x270   :  { %2076 = vmatprep.subr.bf16.mxu0 %v3732_v12  ;;  %v3792_v12 = vld [vmem:[#allocation7 + $0x3cc] ss:$16 sps:$4 sm:$0xff]  }
 0x273   :  { %2077 = vmatpush1.bf16.msra.mxu0 %v3730_v14  ;;  %v3865_v14 = vld [vmem:[#allocation8 + $0x238] ss:$40 sps:$4 sm:$0xff]  }
 0x274   :  { %2078 = vmatprep.subr.bf16.mxu0 %v3735_v15  ;;  %v4330_v15 = vld [vmem:[#allocation10 + $0x16] sm:$0x3]  ;;  %2383 = vmatpush1.bf16.msra.mxu1 %v3865_v14  ;;  %v3841_v14 = vld [vmem:[#allocation8 + $0x4b0] ss:$40 sps:$4 sm:$0xff]  }
 0x277   :  { %2079 = vmatpush1.bf16.msra.mxu0 %v3733_v16  ;;  %v3870_v16 = vld [vmem:[#allocation8 + $0x28c] ss:$40 sps:$4 sm:$0xff]  }
 0x278   :  { %2080 = vmatprep.subr.bf16.mxu0 %v3738_v56  ;;  %v3790_v56 = vld [vmem:[#allocation7 + $0x3c8] ss:$16 sps:$4 sm:$0xff]   ;;  %2384 = vmatprep.subr.bf16.mxu1 %v3870_v16 }
 0x27b   :  { %2081 = vmatpush1.bf16.msra.mxu0 %v3736_v18  ;;  %v3795_v18 = vld [vmem:[#allocation7 + $0x3ec] ss:$16 sps:$4 sm:$0xff]  }
 0x27c   :  { %2082 = vmatprep.subr.bf16.mxu0 %v3741_v19  ;;  %v1249_v19 = vrot.slane %v4330_v15, %v4264_v13 }
 0x27f   :  { %2083 = vmatpush1.bf16.msra.mxu0 %v3739_v20  ;;  %v3868_v20 = vld [vmem:[#allocation8 + $0x288] ss:$40 sps:$4 sm:$0xff]  }
 0x280   :  { %2084 = vmatprep.subr.bf16.mxu0 %v3744_v21  ;;  %v3873_v21 = vld [vmem:[#allocation8 + $0x2dc] ss:$40 sps:$4 sm:$0xff]   ;;  %2385 = vmatpush1.bf16.msra.mxu1 %v3868_v20 }
 0x281   :  { %2386 = vmatprep.subr.bf16.mxu1 %v3873_v21 }
 0x283   :  { %2085 = vmatpush1.bf16.msra.mxu0 %v3742_v22 }
 0x284   :  { %2086 = vmatprep.subr.bf16.mxu0 %v3747_v23  ;;  %v3793_v23 = vld [vmem:[#allocation7 + $0x3e8] ss:$16 sps:$4 sm:$0xff]  }
 0x287   :  { %2087 = vmatpush1.bf16.msra.mxu0 %v3745_v24  ;;  %v944_v24 = vmul.f32 0.25, %v4314_v36  ;;  %v3879_v36 = vld [vmem:[#allocation8 + $0x37c] ss:$40 sps:$4 sm:$0xff]  }
 0x288   :  { %2097 = vmatprep.subr.bf16.mxu0 %v3750_v26  ;;  %v3798_v26 = vld [vmem:[#allocation8 + $0x4] ss:$40 sps:$4 sm:$0xff]  }
 0x28a   :  { %2089 = vmatmul.mubr.bf16.vlgmr.msra.gmra.mrb[32].mxu0 %v1720_v29  ;;  %v3871_v29 = vld [vmem:[#allocation8 + $0x2d8] ss:$40 sps:$4 sm:$0xff]  }
 0x28b   :  { %2098 = vmatpush1.bf16.msra.mxu0 %v3748_v28  ;;  %2129 = vmatprep.mubr.bf16.mxu0 %v1723_v30  ;;  %v3876_v30 = vld [vmem:[#allocation8 + $0x32c] ss:$40 sps:$4 sm:$0xff]  }
 0x28c   :  { %2099 = vmatprep.subr.bf16.mxu0 %v3753_v60  ;;  %2387 = vmatpush1.bf16.msra.mxu1 %v3871_v29 }
 0x28d   :  { %2388 = vmatprep.subr.bf16.mxu1 %v3876_v30 }
 0x28f   :  { %2100 = vmatpush1.bf16.msra.mxu0 %v3751_v31 }
 0x290   :  { %2101 = vmatprep.subr.bf16.mxu0 %v3756_v32  ;;  %v3796_v32 = vld [vmem:[#allocation8] ss:$40 sps:$4 sm:$0xff]  }
 0x293   :  { %2102 = vmatpush1.bf16.msra.mxu0 %v3754_v33  ;;  %v1722_v33 = vpack.c.bf16 %v944_v24, %v944_v24 }
 0x294   :  { %2103 = vmatprep.subr.bf16.mxu0 %v3759_v57  ;;  %v3801_v57 = vld [vmem:[#allocation8 + $0x54] ss:$40 sps:$4 sm:$0xff]  }
 0x297   :  { %2104 = vmatpush1.bf16.msra.mxu0 %v3757_v34 }
 0x298   :  { %2105 = vmatprep.subr.bf16.mxu0 %v3762_v39  ;;  %v3874_v39 = vld [vmem:[#allocation8 + $0x328] ss:$40 sps:$4 sm:$0xff]  }
 0x299   :  { %2389 = vmatpush1.bf16.msra.mxu1 %v3874_v39 }
 0x29a   :  { %2390 = vmatprep.subr.bf16.mxu1 %v3879_v36  ;;  %v3892_v36 = vld [vmem:[#allocation8 + $0x10] ss:$40 sps:$4 sm:$0xff]  }
 0x29b   :  { %2106 = vmatpush1.bf16.msra.mxu0 %v3760_v35  ;;  %v3799_v35 = vld [vmem:[#allocation8 + $0x50] ss:$40 sps:$4 sm:$0xff]  }
 0x29c   :  { %2107 = vmatprep.subr.bf16.mxu0 %v3765_v38  ;;  %v3804_v38 = vld [vmem:[#allocation8 + $0xa4] ss:$40 sps:$4 sm:$0xff]  }
 0x29f   :  { %2108 = vmatpush1.bf16.msra.mxu0 %v3763_v37  ;;  %v3877_v37 = vld [vmem:[#allocation8 + $0x378] ss:$40 sps:$4 sm:$0xff]  }
 0x2a0   :  { %2109 = vmatprep.subr.bf16.mxu0 %v3768_v40  ;;  %v3882_v40 = vld [vmem:[#allocation8 + $0x3cc] ss:$40 sps:$4 sm:$0xff]   ;;  %2391 = vmatpush1.bf16.msra.mxu1 %v3877_v37  ;;  %v3895_v37 = vld [vmem:[#allocation8 + $0x60] ss:$40 sps:$4 sm:$0xff]  }
 0x2a1   :  { %2392 = vmatprep.subr.bf16.mxu1 %v3882_v40  ;;  %v3900_v40 = vld [vmem:[#allocation8 + $0xb4] ss:$40 sps:$4 sm:$0xff]  }
 0x2a3   :  { %2110 = vmatpush1.bf16.msra.mxu0 %v3766_v41  ;;  %v3802_v41 = vld [vmem:[#allocation8 + $0xa0] ss:$40 sps:$4 sm:$0xff]  }
 0x2a4   :  { %2111 = vmatprep.subr.bf16.mxu0 %v3771_v43  ;;  %v3807_v43 = vld [vmem:[#allocation8 + $0xf4] ss:$40 sps:$4 sm:$0xff]   ;;  %2393 = vmatpush1.bf16.msra.mxu1 %v3880_v44  ;;  %v3901_v44 = vld [vmem:[#allocation8 + $0x100] ss:$40 sps:$4 sm:$0xff]  }
 0x2a5   :  { %2394 = vmatprep.subr.bf16.mxu1 %v3885_v45  ;;  %v3906_v45 = vld [vmem:[#allocation8 + $0x154] ss:$40 sps:$4 sm:$0xff]  }
 0x2a7   :  { %2112 = vmatpush1.bf16.msra.mxu0 %v3769_v46  ;;  %v3805_v46 = vld [vmem:[#allocation8 + $0xf0] ss:$40 sps:$4 sm:$0xff]  }
 0x2a8   :  { %2113 = vmatprep.subr.bf16.mxu0 %v3774_v17  ;;  %v3883_v17 = vld [vmem:[#allocation8 + $0x418] ss:$40 sps:$4 sm:$0xff]  }
 0x2a9   :  { %2395 = vmatpush1.bf16.msra.mxu1 %v3883_v17  ;;  %v3907_v17 = vld [vmem:[#allocation8 + $0x1a0] ss:$40 sps:$4 sm:$0xff]  }
 0x2ab   :  { %2114 = vmatpush1.bf16.msra.mxu0 %v3772_v49  ;;  %v3811_v49 = vld [vmem:[#allocation8 + $0x190] ss:$40 sps:$4 sm:$0xff]  }
 0x2ac   :  { %2115 = vmatprep.subr.bf16.mxu0 %v3777_v61  ;;  %v3816_v61 = vld [vmem:[#allocation8 + $0x1e4] ss:$40 sps:$4 sm:$0xff]  }
 0x2af   :  { %2116 = vmatpush1.bf16.msra.mxu0 %v3775_v52  ;;  %v3817_v52 = vld [vmem:[#allocation8 + $0x230] ss:$40 sps:$4 sm:$0xff]  }
 0x2b0   :  { %2117 = vmatprep.subr.bf16.mxu0 %v3780_v53  ;;  %v3822_v53 = vld [vmem:[#allocation8 + $0x284] ss:$40 sps:$4 sm:$0xff]  }
 0x2b3   :  { %2118 = vmatpush1.bf16.msra.mxu0 %v3778_v59  ;;  %v3823_v59 = vld [vmem:[#allocation8 + $0x2d0] ss:$40 sps:$4 sm:$0xff]  }
 0x2b4   :  { %2119 = vmatprep.subr.bf16.mxu0 %v3783_v1  ;;  %v3828_v1 = vld [vmem:[#allocation8 + $0x324] ss:$40 sps:$4 sm:$0xff]  }
 0x2b7   :  { %2120 = vmatpush1.bf16.msra.mxu0 %v3781_v10  ;;  %v3829_v10 = vld [vmem:[#allocation8 + $0x370] ss:$40 sps:$4 sm:$0xff]  }
 0x2b8   :  { %2121 = vmatprep.subr.bf16.mxu0 %v3786_v63  ;;  %v3834_v63 = vld [vmem:[#allocation8 + $0x3c4] ss:$40 sps:$4 sm:$0xff]  }
 0x2bb   :  { %2122 = vmatpush1.bf16.msra.mxu0 %v3784_v62  ;;  %v3835_v62 = vld [vmem:[#allocation8 + $0x410] ss:$40 sps:$4 sm:$0xff]  }
 0x2bc   :  { %2123 = vmatprep.subr.bf16.mxu0 %v3789_v6  ;;  %v1245_v6 = vrot.slane %v4330_v15, %v4261_v11 }
 0x2bf   :  { %2124 = vmatpush1.bf16.msra.mxu0 %v3787_v9 }
 0x2c0   :  { %2125 = vmatprep.subr.bf16.mxu0 %v3792_v12  ;;  %v3843_v12 = vld [vmem:[#allocation8 + $0x4b4] ss:$40 sps:$4 sm:$0xff]  }
 0x2c3   :  { %v4334_v22 = vpop.f32.mrb[20].mxu1  ;;  %2126 = vmatpush1.bf16.msra.mxu0 %v3790_v56 }
 0x2c4   :  { %v1649_v25 = vpop.f32.mrb[21].mxu1  ;;  %2127 = vmatprep.subr.bf16.mxu0 %v3795_v18  ;;  %v3499_v9 = vadd.f32 %v4334_v22, %v1245_v6  ;;  %v3888_v18 = vld [vmem:[#allocation8 + $0x46c] ss:$40 sps:$4 sm:$0xff]   ;;  %v3924_v6 = vld [vmem:[#allocation8 + $0x3d8] ss:$40 sps:$4 sm:$0xff]  }
 0x2c5   :  { %v3500_v27 = vadd.f32 %v1649_v25, %v1249_v19  ;;  %v1651_v28 = vpop.f32.mrb[22].mxu1  ;;  %v3886_v19 = vld [vmem:[#allocation8 + $0x468] ss:$40 sps:$4 sm:$0xff]   ;;  %2396 = vmatprep.subr.bf16.mxu1 %v3888_v18  ;;  %v3889_v25 = vld [vmem:[#allocation8 + $0x4b8] ss:$40 sps:$4 sm:$0xff]  }
 0x2c6   :  { %v1652_v60 = vpop.f32.mrb[23].mxu1  ;;  %v1654_v16 = vmax.f32 %v3499_v9, 0.0  ;;  %2397 = vmatpush1.bf16.msra.mxu1 %v3886_v19  ;;  %v3894_v22 = vld [vmem:[#allocation8 + $0x14] ss:$40 sps:$4 sm:$0xff]   ;;  %v3927_v9 = vld [vmem:[#allocation8 + $0x1a8] ss:$40 sps:$4 sm:$0xff]  }
 0x2c7   :  { %v1655_v31 = vmax.f32 %v3500_v27, 0.0  ;;  %2128 = vmatpush1.bf16.msra.mxu0 %v3793_v23  ;;  %v3891_v23 = vld [vmem:[#allocation8 + $0x4bc] ss:$40 sps:$4 sm:$0xff]   ;;  %v3933_v19 = vld [vmem:[#allocation8 + $0x6c] ss:$40 sps:$4 sm:$0xff]  }
 0x2c8   :  { %2569 = vmatprep.subr.bf16.mxu0 %v3798_v26  ;;  %v2172_v56 = vpack.c.bf16 %v1654_v16, %v1654_v16  ;;  %2398 = vmatprep.subr.bf16.mxu1 %v3891_v23  ;;  %v1724_v26 = vld [vmem:[#allocation10 + $0x18] sm:$0x3]  ;;  %v3930_v16 = vld [vmem:[#allocation8 + $0x4c8] ss:$40 sps:$4 sm:$0xff]   ;;  %v3932_v18 = vld [vmem:[#allocation8 + $0x1c] ss:$40 sps:$4 sm:$0xff]  }
 0x2c9   :  { %v2173_v34 = vpack.c.bf16 %v1655_v31, %v1655_v31  ;;  %v1729_v27 = vrot.slane %v1724_v26, %v4261_v11  ;;  %v1733_v28 = vrot.slane %v1724_v26, %v4264_v13  ;;  %v3937_v23 = vld [vmem:[#allocation8 + $0x1ac] ss:$40 sps:$4 sm:$0xff]  }
 0x2ca   :  { %2130 = vmatmul.mubr.bf16.vlgmr.msra.gmra.mrb[32].mxu0 %v1722_v33  ;;  %2399 = vmatpush1.bf16.msra.mxu1 %v3889_v25 }
 0x2cb   :  { %2570 = vmatpush1.bf16.msra.mxu0 %v3796_v32  ;;  %2601 = vmatprep.mubr.bf16.mxu0 %v2173_v34 }
 0x2cc   :  { %2571 = vmatprep.subr.bf16.mxu0 %v3801_v57  ;;  %2707 = vmatprep.subr.bf16.mxu1 %v3894_v22 }
 0x2cf   :  { %2572 = vmatpush1.bf16.msra.mxu0 %v3799_v35 }
 0x2d0   :  { %2573 = vmatprep.subr.bf16.mxu0 %v3804_v38  ;;  %v3897_v38 = vld [vmem:[#allocation8 + $0x64] ss:$40 sps:$4 sm:$0xff]  }
 0x2d3   :  { %2574 = vmatpush1.bf16.msra.mxu0 %v3802_v41  ;;  %v3898_v41 = vld [vmem:[#allocation8 + $0xb0] ss:$40 sps:$4 sm:$0xff]  }
 0x2d4   :  { %2575 = vmatprep.subr.bf16.mxu0 %v3807_v43  ;;  %v3903_v43 = vld [vmem:[#allocation8 + $0x104] ss:$40 sps:$4 sm:$0xff]  }
 0x2d7   :  { %2576 = vmatpush1.bf16.msra.mxu0 %v3805_v46  ;;  %v3904_v46 = vld [vmem:[#allocation8 + $0x150] ss:$40 sps:$4 sm:$0xff]  }
 0x2d8   :  { %2577 = vmatprep.subr.bf16.mxu0 %v3810_v3  ;;  %v3909_v3 = vld [vmem:[#allocation8 + $0x1a4] ss:$40 sps:$4 sm:$0xff]  }
 0x2db   :  { %2578 = vmatpush1.bf16.msra.mxu0 %v3808_v47  ;;  %v3912_v47 = vld [vmem:[#allocation8 + $0x1f4] ss:$40 sps:$4 sm:$0xff]  }
 0x2dc   :  { %2579 = vmatprep.subr.bf16.mxu0 %v3813_v48  ;;  %v3136_v48 = vld [vmem:[#allocation10 + $0x1a] ss:$0 sm:$0xff] }
 0x2df   :  { %2580 = vmatpush1.bf16.msra.mxu0 %v3811_v49 }
 0x2e0   :  { %2581 = vmatprep.subr.bf16.mxu0 %v3816_v61  ;;  %v3915_v61 = vld [vmem:[#allocation8 + $0x244] ss:$40 sps:$4 sm:$0xff]  }
 0x2e3   :  { %2582 = vmatpush1.bf16.msra.mxu0 %v3814_v50  ;;  %v3913_v50 = vld [vmem:[#allocation8 + $0x240] ss:$40 sps:$4 sm:$0xff]  }
 0x2e4   :  { %2583 = vmatprep.subr.bf16.mxu0 %v3819_v51 }
 0x2e7   :  { %2584 = vmatpush1.bf16.msra.mxu0 %v3817_v52 }
 0x2e8   :  { %2585 = vmatprep.subr.bf16.mxu0 %v3822_v53 }
 0x2eb   :  { %2586 = vmatpush1.bf16.msra.mxu0 %v3820_v54 }
 0x2ec   :  { %2587 = vmatprep.subr.bf16.mxu0 %v3825_v58 }
 0x2ef   :  { %2588 = vmatpush1.bf16.msra.mxu0 %v3823_v59 }
 0x2f0   :  { %2589 = vmatprep.subr.bf16.mxu0 %v3828_v1  ;;  %v3916_v1 = vld [vmem:[#allocation8 + $0x298] ss:$40 sps:$4 sm:$0xff]  }
 0x2f3   :  { %2590 = vmatpush1.bf16.msra.mxu0 %v3826_v2  ;;  %v3917_v2 = vld [vmem:[#allocation8 + $0x18] ss:$40 sps:$4 sm:$0xff]  }
 0x2f4   :  { %2591 = vmatprep.subr.bf16.mxu0 %v3831_v4  ;;  %v3918_v4 = vld [vmem:[#allocation8 + $0x2e8] ss:$40 sps:$4 sm:$0xff]  }
 0x2f7   :  { %2592 = vmatpush1.bf16.msra.mxu0 %v3829_v10  ;;  %v3919_v10 = vld [vmem:[#allocation8 + $0x68] ss:$40 sps:$4 sm:$0xff]  }
 0x2f8   :  { %2593 = vmatprep.subr.bf16.mxu0 %v3834_v63  ;;  %v3920_v63 = vld [vmem:[#allocation8 + $0x338] ss:$40 sps:$4 sm:$0xff]  }
 0x2fb   :  { %2594 = vmatpush1.bf16.msra.mxu0 %v3832_v55  ;;  %v3921_v55 = vld [vmem:[#allocation8 + $0xb8] ss:$40 sps:$4 sm:$0xff]  }
 0x2fc   :  { %2595 = vmatprep.subr.bf16.mxu0 %v3837_v5  ;;  %v3922_v5 = vld [vmem:[#allocation8 + $0x388] ss:$40 sps:$4 sm:$0xff]  }
 0x2ff   :  { %2596 = vmatpush1.bf16.msra.mxu0 %v3835_v62  ;;  %v3923_v62 = vld [vmem:[#allocation8 + $0x108] ss:$40 sps:$4 sm:$0xff]  }
 0x300   :  { %2597 = vmatprep.subr.bf16.mxu0 %v3840_v7  ;;  %v3925_v7 = vld [vmem:[#allocation8 + $0x158] ss:$40 sps:$4 sm:$0xff]  }
 0x303   :  { %2598 = vmatpush1.bf16.msra.mxu0 %v3838_v8  ;;  %v3926_v8 = vld [vmem:[#allocation8 + $0x428] ss:$40 sps:$4 sm:$0xff]  }
 0x304   :  { %2599 = vmatprep.subr.bf16.mxu0 %v3843_v12  ;;  %v3928_v12 = vld [vmem:[#allocation8 + $0x478] ss:$40 sps:$4 sm:$0xff]  }
 0x307   :  { %2600 = vmatpush1.bf16.msra.mxu0 %v3841_v14  ;;  %v3929_v14 = vld [vmem:[#allocation8 + $0x1f8] ss:$40 sps:$4 sm:$0xff]  }
 0x308   :  { %3400 = vmatprep.subr.bf16.mxu0 %v3916_v1 }
 0x30a   :  { %2602 = vmatmul.mubr.bf16.vlgmr.msra.gmra.mrb[36].mxu0 %v2172_v56  ;;  %v3931_v56 = vld [vmem:[#allocation8 + $0x248] ss:$40 sps:$4 sm:$0xff]  }
 0x30b   :  { %3401 = vmatpush3.bf16.msra.mxu0 %v3917_v2 }
 0x30c   :  { %3402 = vmatprep.subr.bf16.mxu0 %v3918_v4 }
 0x30f   :  { %3403 = vmatpush3.bf16.msra.mxu0 %v3919_v10 }
 0x310   :  { %3404 = vmatprep.subr.bf16.mxu0 %v3920_v63 }
 0x313   :  { %3405 = vmatpush3.bf16.msra.mxu0 %v3921_v55 }
 0x314   :  { %3406 = vmatprep.subr.bf16.mxu0 %v3922_v5 }
 0x317   :  { %3407 = vmatpush3.bf16.msra.mxu0 %v3923_v62 }
 0x318   :  { %3408 = vmatprep.subr.bf16.mxu0 %v3924_v6 }
 0x31b   :  { %3409 = vmatpush3.bf16.msra.mxu0 %v3925_v7 }
 0x31c   :  { %3410 = vmatprep.subr.bf16.mxu0 %v3926_v8 }
 0x31d   :  { %v1165_v20 = vpop.f32.mrb[28].mxu0 }
 0x31e   :  { %v3477_v15 = vpop.f32.mrb[29].mxu0  ;;  %v1166_v49 = vadd.f32 %v3136_v48, %v1165_v20  ;;  %v3934_v20 = vld [vmem:[#allocation8 + $0xbc] ss:$40 sps:$4 sm:$0xff]  }
 0x31f   :  { %v1168_v21 = vpop.f32.mrb[30].mxu0  ;;  %3411 = vmatpush3.bf16.msra.mxu0 %v3927_v9  ;;  %v3935_v15 = vld [vmem:[#allocation8 + $0x10c] ss:$40 sps:$4 sm:$0xff]  }
 0x320   :  { %v3478_v24 = vpop.f32.mrb[31].mxu0  ;;  %v1171_v51 = vmax.f32 %v1166_v49, 0.0  ;;  %3412 = vmatprep.subr.bf16.mxu0 %v3928_v12  ;;  %v3936_v21 = vld [vmem:[#allocation8 + $0x15c] ss:$40 sps:$4 sm:$0xff]  }
 0x321   :  { %v3370_v49 = vld [vmem:[#allocation10 + $0x1e] ss:$0 sm:$0xff] }
 0x322   :  { %v2626_v52 = vpack.c.bf16 %v1171_v51, %v1171_v51 }
 0x323   :  { %3413 = vmatpush3.bf16.msra.mxu0 %v3929_v14 }
 0x324   :  { %3414 = vmatprep.subr.bf16.mxu0 %v3930_v16 }
 0x327   :  { %3415 = vmatpush3.bf16.msra.mxu0 %v3931_v56 }
 0x39d   :  { %v2131_v29 = vpop.f32.mrb[32].mxu0 }
 0x39e   :  { %v3501_v60 = vadd.f32 %v2131_v29, %v1729_v27  ;;  %v2133_v30 = vpop.f32.mrb[33].mxu0  ;;  %v2750_v29 = vld [vmem:[#allocation10 + $0x1b] sm:$0x3] }
 0x39f   :  { %v3502_v31 = vadd.f32 %v2133_v30, %v1733_v28  ;;  %v2135_v32 = vpop.f32.mrb[34].mxu0 }
 0x3a0   :  { %v2138_v33 = vmax.f32 %v3501_v60, 0.0  ;;  %v2136_v57 = vpop.f32.mrb[35].mxu0  ;;  %v2755_v60 = vrot.slane %v2750_v29, %v4261_v11  ;;  %v3939_v11 = vld [vmem:[#allocation8 + $0x24c] ss:$40 sps:$4 sm:$0xff]  }
 0x3a1   :  { %v2139_v34 = vmax.f32 %v3502_v31, 0.0  ;;  %v2759_v31 = vrot.slane %v2750_v29, %v4264_v13 }
 0x3a2   :  { %v2206_v35 = vpack.c.bf16 %v2138_v33, %v2138_v33 }
 0x3a3   :  { %v2207_v39 = vpack.c.bf16 %v2139_v34, %v2139_v34 }
 0x3a5   :  { %2400 = vmatprep.mubr.bf16.mxu1 %v2207_v39 }
 0x3a6   :  { %2401 = vmatmul.mubr.bf16.vlgmr.msra.gmra.mrb[24].mxu1 %v2206_v35 }
 0x3a7   :  { %2708 = vmatpush1.bf16.msra.mxu1 %v3892_v36  ;;  %2739 = vmatprep.mubr.bf16.mxu1 %v4091_v0  ;;  %v3910_v0 = vld [vmem:[#allocation8 + $0x1f0] ss:$40 sps:$4 sm:$0xff]  }
 0x3a8   :  { %2709 = vmatprep.subr.bf16.mxu1 %v3897_v38 }
 0x3ab   :  { %2710 = vmatpush1.bf16.msra.mxu1 %v3895_v37 }
 0x3ac   :  { %2711 = vmatprep.subr.bf16.mxu1 %v3900_v40 }
 0x3af   :  { %2712 = vmatpush1.bf16.msra.mxu1 %v3898_v41 }
 0x3b0   :  { %2713 = vmatprep.subr.bf16.mxu1 %v3903_v43  ;;  %v3938_v43 = vld [vmem:[#allocation8 + $0x1fc] ss:$40 sps:$4 sm:$0xff]  }
 0x3b3   :  { %2714 = vmatpush1.bf16.msra.mxu1 %v3901_v44  ;;  %v3353_v44 = vld [vmem:[#allocation10 + $0x1d] ss:$0 sm:$0xff] }
 0x3b4   :  { %2715 = vmatprep.subr.bf16.mxu1 %v3906_v45 }
 0x3b7   :  { %2716 = vmatpush1.bf16.msra.mxu1 %v3904_v46 }
 0x3b8   :  { %2717 = vmatprep.subr.bf16.mxu1 %v3909_v3 }
 0x3bb   :  { %2718 = vmatpush1.bf16.msra.mxu1 %v3907_v17 }
 0x3bc   :  { %2719 = vmatprep.subr.bf16.mxu1 %v3912_v47 }
 0x3bf   :  { %2720 = vmatpush1.bf16.msra.mxu1 %v3910_v0 }
 0x3c0   :  { %2721 = vmatprep.subr.bf16.mxu1 %v3915_v61 }
 0x3c3   :  { %2722 = vmatpush1.bf16.msra.mxu1 %v3913_v50 }
 0x3c4   :  { %3479 = vmatprep.subr.bf16.mxu1 %v4092_v42 }
 0x3c6   :  { %2740 = vmatmul.mubr.bf16.vlgmr.msra.gmra.mrb[28].mxu1 %v2626_v52 }
 0x3c7   :  { %3495 = vmatprep.mubr.msk.bf16.mxu1 %vm4093_vm1, %v4092_v42  ;;  %3480 = vmatpush3.bf16.msra.mxu1 %v3932_v18 }
 0x3c8   :  { %3481 = vmatprep.subr.bf16.mxu1 %v4092_v42 }
 0x3cb   :  { %3482 = vmatpush3.bf16.msra.mxu1 %v3933_v19 }
 0x3cc   :  { %3483 = vmatprep.subr.bf16.mxu1 %v4092_v42 }
 0x3cf   :  { %3484 = vmatpush3.bf16.msra.mxu1 %v3934_v20 }
 0x3d0   :  { %3485 = vmatprep.subr.bf16.mxu1 %v4092_v42 }
 0x3d3   :  { %3486 = vmatpush3.bf16.msra.mxu1 %v3935_v15 }
 0x3d4   :  { %3487 = vmatprep.subr.bf16.mxu1 %v4092_v42 }
 0x3d7   :  { %3488 = vmatpush3.bf16.msra.mxu1 %v3936_v21 }
 0x3d8   :  { %3489 = vmatprep.subr.bf16.mxu1 %v4092_v42 }
 0x3db   :  { %3490 = vmatpush3.bf16.msra.mxu1 %v3937_v23 }
 0x3dc   :  { %3491 = vmatprep.subr.bf16.mxu1 %v4092_v42 }
 0x3dd   :  { %v2603_v53 = vpop.f32.mrb[36].mxu0 }
 0x3de   :  { %v2605_v54 = vpop.f32.mrb[37].mxu0 }
 0x3df   :  { %v2607_v58 = vpop.f32.mrb[38].mxu0  ;;  %3492 = vmatpush3.bf16.msra.mxu1 %v3938_v43 }
 0x3e0   :  { %v2608_v59 = vpop.f32.mrb[39].mxu0  ;;  %3493 = vmatprep.subr.bf16.mxu1 %v4092_v42 }
 0x3e3   :  { %3494 = vmatpush3.bf16.msra.mxu1 %v3939_v11 }
 0x479   :  { %v2402_v24 = vpop.f32.mrb[24].mxu1 }
 0x47a   :  { %v2604_v25 = vadd.f32 %v2603_v53, %v2402_v24  ;;  %v2404_v22 = vpop.f32.mrb[25].mxu1 }
 0x47b   :  { %v2606_v26 = vadd.f32 %v2605_v54, %v2404_v22  ;;  %v2406_v27 = vpop.f32.mrb[26].mxu1 }
 0x47c   :  { %v2407_v28 = vpop.f32.mrb[27].mxu1 }
 0x499   :  { %v2741_v30 = vpop.f32.mrb[28].mxu1 }
 0x49a   :  { %v2748_v32 = vadd.f32 %v2741_v30, %v2604_v25  ;;  %v2743_v33 = vpop.f32.mrb[29].mxu1 }
 0x49b   :  { %v2749_v57 = vadd.f32 %v2743_v33, %v2606_v26  ;;  %v2745_v34 = vpop.f32.mrb[30].mxu1 }
 0x49c   :  { %v2762_v39 = vadd.f32 %v2755_v60, %v2748_v32  ;;  %v2746_v36 = vpop.f32.mrb[31].mxu1 }
 0x49d   :  { %v2763_v35 = vadd.f32 %v2759_v31, %v2749_v57 }
 0x49e   :  { %v2764_v38 = vmax.f32 %v2762_v39, 0.0 }
 0x49f   :  { %v2765_v37 = vmax.f32 %v2763_v35, 0.0 }
 0x4a0   :  { %v2798_v41 = vpack.c.bf16 %v2764_v38, %v2764_v38 }
 0x4a1   :  { %v2799_v40 = vpack.c.bf16 %v2765_v37, %v2765_v37 }
 0x4a3   :  { %2935 = vmatprep.mubr.bf16.mxu0 %v2799_v40 }
 0x4a4   :  { %2936 = vmatmul.mubr.bf16.vlgmr.msra.gmra.mrb[40].mxu0 %v2798_v41 }
 0x577   :  { %v3416_v13 = vpop.f32.mrb[40].mxu0 }
 0x578   :  { %v3417_v45 = vpop.f32.mrb[41].mxu0 }
 0x579   :  { %v3418_v46 = vadd.f32 %v3417_v45, %v3416_v13  ;;  %v3419_v3 = vpop.f32.mrb[42].mxu0 }
 0x57a   :  { %v3420_v17 = vpop.f32.mrb[43].mxu0 }
 0x57b   :  { %v2938_v47 = vadd.f32 %v3418_v46, %v3353_v44 }
 0x57d   :  { %v2943_v48 = vmax.f32 %v2938_v47, 0.0 }
 0x57f   :  { %v2960_v0 = vpack.c.bf16 %v2943_v48, %v2943_v48 }
 0x581   :  { %3496 = vmatmul.mubr.bf16.vlgmr.msra.gmra.mrb[32].mxu1 %v2960_v0 }
 0x654   :  { %v3050_v61 = vpop.f32.mrb[32].mxu1 }
 0x655   :  { %v3051_v50 = vadd.f32 %v3370_v49, %v3050_v61  ;;  %v3497_v51 = vpop.f32.mrb[33].mxu1 }
 0x656   :  { %v3053_v42 = vpop.f32.mrb[34].mxu1 }
 0x657   :  { %3056 = vst [vmem:[#allocation11] sm:$0xff] %v3051_v50  ;;  %v3498_v52 = vpop.f32.mrb[35].mxu1 }
 0x658   :  { %4061 = shalt.err (!%p4058_p2)
}
 0x659   :  { %s4062_s8 = scalar_lea.hbm %s4372_s5, 128 }
 0x65a   :  { %p4063_p3 = scmp.ne.s32.totalorder %s4372_s5, %s4062_s8  ;;  %p4066_p4 = scmp.lt.u32.totalorder %s4062_s8, %s4372_s5 }
 0x65c   :  { %p4068_p5 = pnand %p4066_p4, %p4063_p3 }
 0x65e   :  { %4071 = shalt.err (!%p4068_p5)
}
 0x65f   :  { %3066 = dma.vmem_to_hbm [thread:$0]  %s3064_s30, 128, %s4372_s5, [#allocation4]  }
 0x660   :  { %4078 = dma.done.wait [#allocation4], 128  }
 0x661   :  { %4079 = vsyncadd [#allocation4], 4294967168 }
 0x662   :  { %3070 = vsyncpa [#allocation3], 1 }
 0x663   :  { %3071 = vsyncpa [#allocation6], 1 }
 0x664   :  { %3072 = vsyncpa [#allocation9], 1 }
 0x665   :  { %3073 = vsyncpa [#allocation4], 1 }

</bundles_post_ra>
